<compile_context>
chip_gen: v5e
topology: v5e:2x2
jax: 0.10.0
libtpu: 0.0.40
codegen_flags: <defaults>
</compile_context>

<pallas_src>
import jax
import jax.numpy as jnp
import numpy as np
from jax import lax
from jax.experimental import pallas as pl
from jax.experimental.pallas import tpu as pltpu


def _qgf_kernel(xyz_all_ref, xyz_q_ref, feat_all_ref, feat_q_ref, out_ref, d2_ref):
    """One (batch, query-tile, K-chunk) grid step of KNN + group + diff."""
    kc_size = out_ref.shape[0]          # neighbours produced by this chunk (static)
    ki = pl.program_id(2)               # K-chunk index (innermost, "arbitrary")

    xyz_all = xyz_all_ref[...]          # (3, N)   f32, lane-dense over points
    feats = feat_all_ref[...]           # (C, N)   f32
    feats_q = feat_q_ref[...]           # (C, Tq)  f32, center features of this tile

    n = xyz_all.shape[1]
    tq = feats_q.shape[1]

    # (Re)build the score matrix once per (batch, query-tile); subsequent K chunks
    # keep peeling neighbours out of the persisted scratch.
    @pl.when(ki == 0)
    def _():
        xyz_q = xyz_q_ref[...]          # (3, Tq)
        # Per-row KNN only needs the ordering of ||q - p||^2 over p for fixed q, so
        # the row-constant ||q||^2 term is dropped: score[q, p] = ||p||^2 - 2 q.p.
        # (f32 MXU dot, contraction over the 3 coords; runs once per query tile.)
        cross = lax.dot_general(xyz_q, xyz_all, (((0,), (0,)), ((), ())),
                                preferred_element_type=jnp.float32)    # (Tq, N)
        p_norm = jnp.sum(xyz_all * xyz_all, axis=0, keepdims=True)     # (1, N)
        d2_ref[...] = p_norm - 2.0 * cross                             # (Tq, N)

    # Loop-invariant column indices: a single (1, N) row, sublane-broadcast in the
    # compares below (the old per-step (Tq, N) iota is gone).
    col = lax.broadcasted_iota(jnp.int32, (1, n), 1)

    dn_gather = (((1,), (1,)), ((), ()))
    last_chunk = ki == pl.num_programs(2) - 1

    def body(s, carry):
        d2 = d2_ref[...]                                                # (Tq, N)
        mn = jnp.min(d2, axis=-1, keepdims=True)                        # (Tq, 1)
        # first (smallest-index) argmin per row
        j = jnp.min(jnp.where(d2 <= mn, col, n), axis=-1, keepdims=True)  # (Tq, 1)
        sel = col == j                                                  # (Tq, N)

        # Mask the chosen column immediately: only `sel` feeds the next step, so the
        # MXU gather + output stores below can overlap the next step's reductions.
        # Skip the writeback on the very last neighbour of the last chunk.
        @pl.when(jnp.logical_or(s + 1 < kc_size, jnp.logical_not(last_chunk)))
        def _():
            d2_ref[...] = jnp.where(sel, jnp.inf, d2)

        # grouped[:, q] = feats[:, j_q]  -- gather via one-hot matmul (MXU)
        onehot = sel.astype(feats.dtype)
        g = lax.dot_general(feats, onehot, dn_gather,
                            preferred_element_type=jnp.float32)         # (C, Tq)
        # two direct, aligned (C, Tq) stores -- no concat temporary / relayout
        out_ref[s, 0] = (g - feats_q).astype(out_ref.dtype)             # diff half
        out_ref[s, 1] = g.astype(out_ref.dtype)                         # grouped half
        return carry

    unroll = kc_size if kc_size <= 8 else 4
    lax.fori_loop(0, kc_size, body, 0, unroll=unroll)


def _tpu_vmem_capacity_bytes():
    try:
        return int(pltpu.get_tpu_info().vmem_capacity_bytes)
    except Exception:
        return 64 << 20     # conservative (v7x-sized) fallback


def _resident_vmem_bytes(n, c, tq, kc):
    """Rough total resident VMEM for one grid step (all f32)."""
    inputs = 2 * 4 * ((3 + c) * n + (3 + c) * tq)    # double-buffered input windows
    out_buf = 2 * 4 * (kc * 2 * c * tq)              # double-buffered output chunk
    d2 = 4 * tq * n                                  # distance scratch
    temps = 3 * 4 * tq * n                           # live (Tq, N) loop temporaries
    return inputs + out_buf + d2 + temps


def _choose_tiles(n, c, nsample, budget):
    """Pick (query tile Tq, K chunk Kc) so total resident VMEM stays under budget."""
    if n % 128 == 0:
        tq_cands = [t for t in (2048, 1024, 512, 256, 128) if n % t == 0] or [n]
    else:
        tq_cands = [n]                               # small / irregular N: one tile
    k_divs = [d for d in range(nsample, 0, -1) if nsample % d == 0]
    for tq in tq_cands:                              # prefer the largest query tile
        for kc in k_divs:                            # then the largest K chunk that...
            # ...keeps one output chunk <= ~4 MiB so its write-back overlaps compute
            if kc > 1 and kc * 2 * c * tq * 4 > (4 << 20):
                continue
            if _resident_vmem_bytes(n, c, tq, kc) <= budget:
                return tq, kc
    return tq_cands[-1], 1


def query_and_group_feature(xyz, features, nsample, *, torch_layout=True):
    """Pallas equivalent of QueryAndGroupFeature(radius=None, nsample, use_feature=True).

    xyz:      (B, N, 3) float32
    features: (B, C, N) float32
    returns   (B, 2C, N, nsample) float32 (torch_layout=True)
              or the kernel-native (B, nsample, 2C, N) (torch_layout=False)
    """
    b, n, three = xyz.shape
    assert three == 3
    b2, c, n2 = features.shape
    assert b2 == b and n2 == n
    assert nsample <= n

    vmem_cap = _tpu_vmem_capacity_bytes()
    budget = max(vmem_cap - (16 << 20), 16 << 20)
    tq, kc_size = _choose_tiles(n, c, nsample, budget)
    n_q_tiles = n // tq
    n_k_chunks = nsample // kc_size

    # Lane-dense coordinate layout: (B, 3, N).
    xyz_t = jnp.transpose(xyz, (0, 2, 1)).astype(jnp.float32)
    features = features.astype(jnp.float32)

    # Kernel-native output layout: (B, K, 2, C, N) -- N (lane axis) dense, halves kept
    # separate so each per-step store is a full aligned (C, Tq) slab.
    out_shape = jax.ShapeDtypeStruct((b, nsample, 2, c, n), jnp.float32)

    flops = 2 * b * nsample * c * n * n + 2 * b * 3 * n * n
    bytes_accessed = 4 * (b * nsample * 2 * c * n      # output writeback
                          + b * (3 + c) * n            # coordinates + features
                          + b * (3 + c) * n)           # query-tile re-reads
    cost = pl.CostEstimate(flops=flops, transcendentals=0,
                           bytes_accessed=bytes_accessed)

    resident = _resident_vmem_bytes(n, c, tq, kc_size)
    vmem_limit = int(min(max(resident + (8 << 20), 32 << 20), vmem_cap - (4 << 20)))

    out = pl.pallas_call(
        _qgf_kernel,
        out_shape=out_shape,
        grid=(b, n_q_tiles, n_k_chunks),
        in_specs=[
            pl.BlockSpec((None, 3, n), lambda bi, qi, ki: (bi, 0, 0)),    # full xyz
            pl.BlockSpec((None, 3, tq), lambda bi, qi, ki: (bi, 0, qi)),  # query xyz
            pl.BlockSpec((None, c, n), lambda bi, qi, ki: (bi, 0, 0)),    # full features
            pl.BlockSpec((None, c, tq), lambda bi, qi, ki: (bi, 0, qi)),  # center feats
        ],
        out_specs=pl.BlockSpec((None, kc_size, 2, c, tq),
                               lambda bi, qi, ki: (bi, ki, 0, 0, qi)),
        scratch_shapes=[pltpu.VMEM((tq, n), jnp.float32)],   # persisted across K chunks
        compiler_params=pltpu.CompilerParams(
            dimension_semantics=("parallel", "parallel", "arbitrary"),
            vmem_limit_bytes=vmem_limit),
        cost_estimate=cost,
    )(xyz_t, xyz_t, features, features)

    out = out.reshape(b, nsample, 2 * c, n)          # kernel-native (B, K, 2C, N)
    if torch_layout:
        # TODO(synk): downstream consumers should ideally take the kernel-native
        # layout; this transpose re-streams the largest tensor once more.
        out = jnp.transpose(out, (0, 2, 3, 1))       # (B, 2C, N, K) as in PyTorch
    return out


def _reference(xyz, features, nsample):
    """Pure-JAX reference mirroring the PyTorch forward (KNN path, new_xyz=None)."""
    d2 = jnp.sum((xyz[:, :, None, :] - xyz[:, None, :, :]) ** 2, axis=-1)   # (B, N, N)
    idx = jnp.argsort(d2, axis=-1)[:, :, :nsample]                          # (B, N, K)
    grouped = jax.vmap(lambda f, i: f[:, i])(features, idx)                 # (B, C, N, K)
    diff = grouped - features[:, :, :, None]
    return jnp.concatenate([diff, grouped], axis=1)                         # (B, 2C, N, K)


if __name__ == "__main__":
    B, N, C, NSAMPLE = 2, 16, 4, 8

    key = jax.random.PRNGKey(0)
    k1, k2 = jax.random.split(key)
    xyz = jax.random.uniform(k1, (B, N, 3), dtype=jnp.float32)
    features = jax.random.normal(k2, (B, C, N), dtype=jnp.float32)

    out = query_and_group_feature(xyz, features, NSAMPLE)
    out = jax.block_until_ready(out)

    ref = _reference(xyz, features, NSAMPLE)
    np.testing.assert_allclose(np.asarray(out), np.asarray(ref), rtol=1e-5, atol=1e-5)

    print("KERNEL_OK")
</pallas_src>

<mosaic_0001>
module attributes {stable_mosaic.version = 11 : i64} {
  func.func @_qgf_kernel(%arg0: i32, %arg1: i32, %arg2: i32, %arg3: memref<1x3x16xf32, #tpu.memory_space<vmem>>, %arg4: memref<1x3x16xf32, #tpu.memory_space<vmem>>, %arg5: memref<1x4x16xf32, #tpu.memory_space<vmem>>, %arg6: memref<1x4x16xf32, #tpu.memory_space<vmem>>, %arg7: memref<1x8x2x4x16xf32, #tpu.memory_space<vmem>>, %arg8: memref<16x16xf32, #tpu.memory_space<vmem>>) attributes {dimension_semantics = [#tpu.dimension_semantics<parallel>, #tpu.dimension_semantics<parallel>, #tpu.dimension_semantics<arbitrary>], iteration_bounds = array<i64: 2, 1, 1>, scalar_prefetch = 0 : i64, scratch_operands = 1 : i64, tpu.core_type = #tpu.core_type<tc>, window_params = [{transform_indices = @transform_0, window_bounds = array<i64: 1, 3, 16>}, {transform_indices = @transform_1, window_bounds = array<i64: 1, 3, 16>}, {transform_indices = @transform_2, window_bounds = array<i64: 1, 4, 16>}, {transform_indices = @transform_3, window_bounds = array<i64: 1, 4, 16>}, {transform_indices = @transform_4, window_bounds = array<i64: 1, 8, 2, 4, 16>}]} {
    %c0 = arith.constant 0 : index
    %c0_0 = arith.constant 0 : index
    %c0_1 = arith.constant 0 : index
    %0 = vector.load %arg3[%c0, %c0_0, %c0_1] : memref<1x3x16xf32, #tpu.memory_space<vmem>>, vector<1x3x16xf32>
    %1 = vector.shape_cast %0 : vector<1x3x16xf32> to vector<3x16xf32>
    %c0_2 = arith.constant 0 : index
    %c0_3 = arith.constant 0 : index
    %c0_4 = arith.constant 0 : index
    %2 = vector.load %arg5[%c0_2, %c0_3, %c0_4] : memref<1x4x16xf32, #tpu.memory_space<vmem>>, vector<1x4x16xf32>
    %3 = vector.shape_cast %2 : vector<1x4x16xf32> to vector<4x16xf32>
    %c0_5 = arith.constant 0 : index
    %c0_6 = arith.constant 0 : index
    %c0_7 = arith.constant 0 : index
    %4 = vector.load %arg6[%c0_5, %c0_6, %c0_7] : memref<1x4x16xf32, #tpu.memory_space<vmem>>, vector<1x4x16xf32>
    %5 = vector.shape_cast %4 : vector<1x4x16xf32> to vector<4x16xf32>
    %c0_i32 = arith.constant 0 : i32
    %6 = arith.cmpi eq, %arg2, %c0_i32 : i32
    %7 = arith.extui %6 : i1 to i32
    %c0_i32_8 = arith.constant 0 : i32
    %8 = arith.cmpi ne, %7, %c0_i32_8 : i32
    scf.if %8 {
      %c0_151 = arith.constant 0 : index
      %c0_152 = arith.constant 0 : index
      %c0_153 = arith.constant 0 : index
      %267 = vector.load %arg4[%c0_151, %c0_152, %c0_153] : memref<1x3x16xf32, #tpu.memory_space<vmem>>, vector<1x3x16xf32>
      %268 = vector.shape_cast %267 : vector<1x3x16xf32> to vector<3x16xf32>
      %cst_154 = arith.constant dense<0.000000e+00> : vector<16x16xf32>
      %269 = tpu.matmul %268, %1, %cst_154 {dimension_numbers = #tpu.dot_dimension_numbers<[0], [0], [1], [1], [0, 1, 1, 1], [], []>} : vector<3x16xf32>, vector<3x16xf32>, vector<16x16xf32> -> vector<16x16xf32>
      %270 = arith.mulf %1, %1 : vector<3x16xf32>
      %cst_155 = arith.constant dense<0.000000e+00> : vector<16xf32>
      %271 = vector.multi_reduction <add>, %270, %cst_155 [0] : vector<3x16xf32> to vector<16xf32>
      %272 = vector.shape_cast %271 : vector<16xf32> to vector<1x16xf32>
      %cst_156 = arith.constant 2.000000e+00 : f32
      %273 = vector.broadcast %cst_156 : f32 to vector<16x16xf32>
      %274 = arith.mulf %273, %269 : vector<16x16xf32>
      %275 = vector.broadcast %272 : vector<1x16xf32> to vector<16x16xf32>
      %276 = arith.subf %275, %274 : vector<16x16xf32>
      %c0_157 = arith.constant 0 : index
      %c0_158 = arith.constant 0 : index
      %277 = vector.load %arg8[%c0_157, %c0_158] : memref<16x16xf32, #tpu.memory_space<vmem>>, vector<16x16xf32>
      tpu.vector_store %arg8[%c0_157, %c0_158], %276 {strides = array<i32>} : memref<16x16xf32, #tpu.memory_space<vmem>>, vector<16x16xf32>,
    } else {
    }
    %9 = tpu.iota {dimensions = array<i32: 1>} : vector<1x16xi32>
    %c0_i32_9 = arith.constant 0 : i32
    %10 = arith.cmpi eq, %arg2, %c0_i32_9 : i32
    %c0_i32_10 = arith.constant 0 : i32
    %c0_11 = arith.constant 0 : index
    %c0_12 = arith.constant 0 : index
    %11 = vector.load %arg8[%c0_11, %c0_12] : memref<16x16xf32, #tpu.memory_space<vmem>>, vector<16x16xf32>
    %cst = arith.constant dense<0x7F800000> : vector<16xf32>
    %12 = vector.multi_reduction <minimumf>, %11, %cst [1] : vector<16x16xf32> to vector<16xf32>
    %13 = vector.shape_cast %12 : vector<16xf32> to vector<16x1xf32>
    %14 = vector.broadcast %13 : vector<16x1xf32> to vector<16x16xf32>
    %15 = arith.cmpf ole, %11, %14 : vector<16x16xf32>
    %c16_i32 = arith.constant 16 : i32
    %16 = vector.shape_cast %9 : vector<1x16xi32> to vector<1x16xi32>
    %17 = vector.broadcast %16 : vector<1x16xi32> to vector<16x16xi32>
    %18 = vector.broadcast %c16_i32 : i32 to vector<16x16xi32>
    %19 = arith.select %15, %17, %18 : vector<16x16xi1>, vector<16x16xi32>
    %cst_13 = arith.constant dense<2147483647> : vector<16xi32>
    %20 = vector.multi_reduction <minsi>, %19, %cst_13 [1] : vector<16x16xi32> to vector<16xi32>
    %21 = vector.shape_cast %20 : vector<16xi32> to vector<16x1xi32>
    %22 = vector.broadcast %9 : vector<1x16xi32> to vector<16x16xi32>
    %23 = vector.broadcast %21 : vector<16x1xi32> to vector<16x16xi32>
    %24 = arith.cmpi eq, %22, %23 : vector<16x16xi32>
    %c1_i32 = arith.constant 1 : i32
    %25 = arith.addi %c0_i32_10, %c1_i32 : i32
    %c8_i32 = arith.constant 8 : i32
    %26 = arith.cmpi slt, %25, %c8_i32 : i32
    %true = arith.constant true
    %27 = arith.xori %10, %true : i1
    %28 = arith.ori %26, %27 : i1
    %29 = arith.extui %28 : i1 to i32
    %c0_i32_14 = arith.constant 0 : i32
    %30 = arith.cmpi ne, %29, %c0_i32_14 : i32
    scf.if %30 {
      %cst_151 = arith.constant 0x7F800000 : f32
      %267 = vector.broadcast %cst_151 : f32 to vector<16x16xf32>
      %268 = arith.select %24, %267, %11 : vector<16x16xi1>, vector<16x16xf32>
      %c0_152 = arith.constant 0 : index
      %c0_153 = arith.constant 0 : index
      %269 = vector.load %arg8[%c0_152, %c0_153] : memref<16x16xf32, #tpu.memory_space<vmem>>, vector<16x16xf32>
      tpu.vector_store %arg8[%c0_152, %c0_153], %268 {strides = array<i32>} : memref<16x16xf32, #tpu.memory_space<vmem>>, vector<16x16xf32>,
    } else {
    }
    %31 = arith.extui %24 : vector<16x16xi1> to vector<16x16xi32>
    %32 = arith.sitofp %31 : vector<16x16xi32> to vector<16x16xf32>
    %cst_15 = arith.constant dense<0.000000e+00> : vector<4x16xf32>
    %33 = tpu.matmul %3, %32, %cst_15 {dimension_numbers = #tpu.dot_dimension_numbers<[1], [1], [0], [0], [0, 0, 1, 0], [], []>} : vector<4x16xf32>, vector<16x16xf32>, vector<4x16xf32> -> vector<4x16xf32>
    %34 = arith.subf %33, %5 : vector<4x16xf32>
    %c0_16 = arith.constant 0 : index
    %35 = arith.index_cast %c0_i32_10 : i32 to index
    %c0_17 = arith.constant 0 : index
    %c0_18 = arith.constant 0 : index
    %c0_19 = arith.constant 0 : index
    %36 = vector.load %arg7[%c0_16, %35, %c0_17, %c0_18, %c0_19] : memref<1x8x2x4x16xf32, #tpu.memory_space<vmem>>, vector<1x1x1x4x16xf32>
    %37 = vector.shape_cast %36 : vector<1x1x1x4x16xf32> to vector<4x16xf32>
    %38 = vector.shape_cast %34 : vector<4x16xf32> to vector<1x1x1x4x16xf32>
    tpu.vector_store %arg7[%c0_16, %35, %c0_17, %c0_18, %c0_19], %38 {strides = array<i32>} : memref<1x8x2x4x16xf32, #tpu.memory_space<vmem>>, vector<1x1x1x4x16xf32>,
    %c0_20 = arith.constant 0 : index
    %39 = arith.index_cast %c0_i32_10 : i32 to index
    %c1 = arith.constant 1 : index
    %c0_21 = arith.constant 0 : index
    %c0_22 = arith.constant 0 : index
    %40 = vector.load %arg7[%c0_20, %39, %c1, %c0_21, %c0_22] : memref<1x8x2x4x16xf32, #tpu.memory_space<vmem>>, vector<1x1x1x4x16xf32>
    %41 = vector.shape_cast %40 : vector<1x1x1x4x16xf32> to vector<4x16xf32>
    %42 = vector.shape_cast %33 : vector<4x16xf32> to vector<1x1x1x4x16xf32>
    tpu.vector_store %arg7[%c0_20, %39, %c1, %c0_21, %c0_22], %42 {strides = array<i32>} : memref<1x8x2x4x16xf32, #tpu.memory_space<vmem>>, vector<1x1x1x4x16xf32>,
    %c1_i32_23 = arith.constant 1 : i32
    %c0_24 = arith.constant 0 : index
    %c0_25 = arith.constant 0 : index
    %43 = vector.load %arg8[%c0_24, %c0_25] : memref<16x16xf32, #tpu.memory_space<vmem>>, vector<16x16xf32>
    %cst_26 = arith.constant dense<0x7F800000> : vector<16xf32>
    %44 = vector.multi_reduction <minimumf>, %43, %cst_26 [1] : vector<16x16xf32> to vector<16xf32>
    %45 = vector.shape_cast %44 : vector<16xf32> to vector<16x1xf32>
    %46 = vector.broadcast %45 : vector<16x1xf32> to vector<16x16xf32>
    %47 = arith.cmpf ole, %43, %46 : vector<16x16xf32>
    %c16_i32_27 = arith.constant 16 : i32
    %48 = vector.shape_cast %9 : vector<1x16xi32> to vector<1x16xi32>
    %49 = vector.broadcast %48 : vector<1x16xi32> to vector<16x16xi32>
    %50 = vector.broadcast %c16_i32_27 : i32 to vector<16x16xi32>
    %51 = arith.select %47, %49, %50 : vector<16x16xi1>, vector<16x16xi32>
    %cst_28 = arith.constant dense<2147483647> : vector<16xi32>
    %52 = vector.multi_reduction <minsi>, %51, %cst_28 [1] : vector<16x16xi32> to vector<16xi32>
    %53 = vector.shape_cast %52 : vector<16xi32> to vector<16x1xi32>
    %54 = vector.broadcast %9 : vector<1x16xi32> to vector<16x16xi32>
    %55 = vector.broadcast %53 : vector<16x1xi32> to vector<16x16xi32>
    %56 = arith.cmpi eq, %54, %55 : vector<16x16xi32>
    %c1_i32_29 = arith.constant 1 : i32
    %57 = arith.addi %c1_i32_23, %c1_i32_29 : i32
    %c8_i32_30 = arith.constant 8 : i32
    %58 = arith.cmpi slt, %57, %c8_i32_30 : i32
    %true_31 = arith.constant true
    %59 = arith.xori %10, %true_31 : i1
    %60 = arith.ori %58, %59 : i1
    %61 = arith.extui %60 : i1 to i32
    %c0_i32_32 = arith.constant 0 : i32
    %62 = arith.cmpi ne, %61, %c0_i32_32 : i32
    scf.if %62 {
      %cst_151 = arith.constant 0x7F800000 : f32
      %267 = vector.broadcast %cst_151 : f32 to vector<16x16xf32>
      %268 = arith.select %56, %267, %43 : vector<16x16xi1>, vector<16x16xf32>
      %c0_152 = arith.constant 0 : index
      %c0_153 = arith.constant 0 : index
      %269 = vector.load %arg8[%c0_152, %c0_153] : memref<16x16xf32, #tpu.memory_space<vmem>>, vector<16x16xf32>
      tpu.vector_store %arg8[%c0_152, %c0_153], %268 {strides = array<i32>} : memref<16x16xf32, #tpu.memory_space<vmem>>, vector<16x16xf32>,
    } else {
    }
    %63 = arith.extui %56 : vector<16x16xi1> to vector<16x16xi32>
    %64 = arith.sitofp %63 : vector<16x16xi32> to vector<16x16xf32>
    %cst_33 = arith.constant dense<0.000000e+00> : vector<4x16xf32>
    %65 = tpu.matmul %3, %64, %cst_33 {dimension_numbers = #tpu.dot_dimension_numbers<[1], [1], [0], [0], [0, 0, 1, 0], [], []>} : vector<4x16xf32>, vector<16x16xf32>, vector<4x16xf32> -> vector<4x16xf32>
    %66 = arith.subf %65, %5 : vector<4x16xf32>
    %c0_34 = arith.constant 0 : index
    %67 = arith.index_cast %c1_i32_23 : i32 to index
    %c0_35 = arith.constant 0 : index
    %c0_36 = arith.constant 0 : index
    %c0_37 = arith.constant 0 : index
    %68 = vector.load %arg7[%c0_34, %67, %c0_35, %c0_36, %c0_37] : memref<1x8x2x4x16xf32, #tpu.memory_space<vmem>>, vector<1x1x1x4x16xf32>
    %69 = vector.shape_cast %68 : vector<1x1x1x4x16xf32> to vector<4x16xf32>
    %70 = vector.shape_cast %66 : vector<4x16xf32> to vector<1x1x1x4x16xf32>
    tpu.vector_store %arg7[%c0_34, %67, %c0_35, %c0_36, %c0_37], %70 {strides = array<i32>} : memref<1x8x2x4x16xf32, #tpu.memory_space<vmem>>, vector<1x1x1x4x16xf32>,
    %c0_38 = arith.constant 0 : index
    %71 = arith.index_cast %c1_i32_23 : i32 to index
    %c1_39 = arith.constant 1 : index
    %c0_40 = arith.constant 0 : index
    %c0_41 = arith.constant 0 : index
    %72 = vector.load %arg7[%c0_38, %71, %c1_39, %c0_40, %c0_41] : memref<1x8x2x4x16xf32, #tpu.memory_space<vmem>>, vector<1x1x1x4x16xf32>
    %73 = vector.shape_cast %72 : vector<1x1x1x4x16xf32> to vector<4x16xf32>
    %74 = vector.shape_cast %65 : vector<4x16xf32> to vector<1x1x1x4x16xf32>
    tpu.vector_store %arg7[%c0_38, %71, %c1_39, %c0_40, %c0_41], %74 {strides = array<i32>} : memref<1x8x2x4x16xf32, #tpu.memory_space<vmem>>, vector<1x1x1x4x16xf32>,
    %c2_i32 = arith.constant 2 : i32
    %c0_42 = arith.constant 0 : index
    %c0_43 = arith.constant 0 : index
    %75 = vector.load %arg8[%c0_42, %c0_43] : memref<16x16xf32, #tpu.memory_space<vmem>>, vector<16x16xf32>
    %cst_44 = arith.constant dense<0x7F800000> : vector<16xf32>
    %76 = vector.multi_reduction <minimumf>, %75, %cst_44 [1] : vector<16x16xf32> to vector<16xf32>
    %77 = vector.shape_cast %76 : vector<16xf32> to vector<16x1xf32>
    %78 = vector.broadcast %77 : vector<16x1xf32> to vector<16x16xf32>
    %79 = arith.cmpf ole, %75, %78 : vector<16x16xf32>
    %c16_i32_45 = arith.constant 16 : i32
    %80 = vector.shape_cast %9 : vector<1x16xi32> to vector<1x16xi32>
    %81 = vector.broadcast %80 : vector<1x16xi32> to vector<16x16xi32>
    %82 = vector.broadcast %c16_i32_45 : i32 to vector<16x16xi32>
    %83 = arith.select %79, %81, %82 : vector<16x16xi1>, vector<16x16xi32>
    %cst_46 = arith.constant dense<2147483647> : vector<16xi32>
    %84 = vector.multi_reduction <minsi>, %83, %cst_46 [1] : vector<16x16xi32> to vector<16xi32>
    %85 = vector.shape_cast %84 : vector<16xi32> to vector<16x1xi32>
    %86 = vector.broadcast %9 : vector<1x16xi32> to vector<16x16xi32>
    %87 = vector.broadcast %85 : vector<16x1xi32> to vector<16x16xi32>
    %88 = arith.cmpi eq, %86, %87 : vector<16x16xi32>
    %c1_i32_47 = arith.constant 1 : i32
    %89 = arith.addi %c2_i32, %c1_i32_47 : i32
    %c8_i32_48 = arith.constant 8 : i32
    %90 = arith.cmpi slt, %89, %c8_i32_48 : i32
    %true_49 = arith.constant true
    %91 = arith.xori %10, %true_49 : i1
    %92 = arith.ori %90, %91 : i1
    %93 = arith.extui %92 : i1 to i32
    %c0_i32_50 = arith.constant 0 : i32
    %94 = arith.cmpi ne, %93, %c0_i32_50 : i32
    scf.if %94 {
      %cst_151 = arith.constant 0x7F800000 : f32
      %267 = vector.broadcast %cst_151 : f32 to vector<16x16xf32>
      %268 = arith.select %88, %267, %75 : vector<16x16xi1>, vector<16x16xf32>
      %c0_152 = arith.constant 0 : index
      %c0_153 = arith.constant 0 : index
      %269 = vector.load %arg8[%c0_152, %c0_153] : memref<16x16xf32, #tpu.memory_space<vmem>>, vector<16x16xf32>
      tpu.vector_store %arg8[%c0_152, %c0_153], %268 {strides = array<i32>} : memref<16x16xf32, #tpu.memory_space<vmem>>, vector<16x16xf32>,
    } else {
    }
    %95 = arith.extui %88 : vector<16x16xi1> to vector<16x16xi32>
    %96 = arith.sitofp %95 : vector<16x16xi32> to vector<16x16xf32>
    %cst_51 = arith.constant dense<0.000000e+00> : vector<4x16xf32>
    %97 = tpu.matmul %3, %96, %cst_51 {dimension_numbers = #tpu.dot_dimension_numbers<[1], [1], [0], [0], [0, 0, 1, 0], [], []>} : vector<4x16xf32>, vector<16x16xf32>, vector<4x16xf32> -> vector<4x16xf32>
    %98 = arith.subf %97, %5 : vector<4x16xf32>
    %c0_52 = arith.constant 0 : index
    %99 = arith.index_cast %c2_i32 : i32 to index
    %c0_53 = arith.constant 0 : index
    %c0_54 = arith.constant 0 : index
    %c0_55 = arith.constant 0 : index
    %100 = vector.load %arg7[%c0_52, %99, %c0_53, %c0_54, %c0_55] : memref<1x8x2x4x16xf32, #tpu.memory_space<vmem>>, vector<1x1x1x4x16xf32>
    %101 = vector.shape_cast %100 : vector<1x1x1x4x16xf32> to vector<4x16xf32>
    %102 = vector.shape_cast %98 : vector<4x16xf32> to vector<1x1x1x4x16xf32>
    tpu.vector_store %arg7[%c0_52, %99, %c0_53, %c0_54, %c0_55], %102 {strides = array<i32>} : memref<1x8x2x4x16xf32, #tpu.memory_space<vmem>>, vector<1x1x1x4x16xf32>,
    %c0_56 = arith.constant 0 : index
    %103 = arith.index_cast %c2_i32 : i32 to index
    %c1_57 = arith.constant 1 : index
    %c0_58 = arith.constant 0 : index
    %c0_59 = arith.constant 0 : index
    %104 = vector.load %arg7[%c0_56, %103, %c1_57, %c0_58, %c0_59] : memref<1x8x2x4x16xf32, #tpu.memory_space<vmem>>, vector<1x1x1x4x16xf32>
    %105 = vector.shape_cast %104 : vector<1x1x1x4x16xf32> to vector<4x16xf32>
    %106 = vector.shape_cast %97 : vector<4x16xf32> to vector<1x1x1x4x16xf32>
    tpu.vector_store %arg7[%c0_56, %103, %c1_57, %c0_58, %c0_59], %106 {strides = array<i32>} : memref<1x8x2x4x16xf32, #tpu.memory_space<vmem>>, vector<1x1x1x4x16xf32>,
    %c3_i32 = arith.constant 3 : i32
    %c0_60 = arith.constant 0 : index
    %c0_61 = arith.constant 0 : index
    %107 = vector.load %arg8[%c0_60, %c0_61] : memref<16x16xf32, #tpu.memory_space<vmem>>, vector<16x16xf32>
    %cst_62 = arith.constant dense<0x7F800000> : vector<16xf32>
    %108 = vector.multi_reduction <minimumf>, %107, %cst_62 [1] : vector<16x16xf32> to vector<16xf32>
    %109 = vector.shape_cast %108 : vector<16xf32> to vector<16x1xf32>
    %110 = vector.broadcast %109 : vector<16x1xf32> to vector<16x16xf32>
    %111 = arith.cmpf ole, %107, %110 : vector<16x16xf32>
    %c16_i32_63 = arith.constant 16 : i32
    %112 = vector.shape_cast %9 : vector<1x16xi32> to vector<1x16xi32>
    %113 = vector.broadcast %112 : vector<1x16xi32> to vector<16x16xi32>
    %114 = vector.broadcast %c16_i32_63 : i32 to vector<16x16xi32>
    %115 = arith.select %111, %113, %114 : vector<16x16xi1>, vector<16x16xi32>
    %cst_64 = arith.constant dense<2147483647> : vector<16xi32>
    %116 = vector.multi_reduction <minsi>, %115, %cst_64 [1] : vector<16x16xi32> to vector<16xi32>
    %117 = vector.shape_cast %116 : vector<16xi32> to vector<16x1xi32>
    %118 = vector.broadcast %9 : vector<1x16xi32> to vector<16x16xi32>
    %119 = vector.broadcast %117 : vector<16x1xi32> to vector<16x16xi32>
    %120 = arith.cmpi eq, %118, %119 : vector<16x16xi32>
    %c1_i32_65 = arith.constant 1 : i32
    %121 = arith.addi %c3_i32, %c1_i32_65 : i32
    %c8_i32_66 = arith.constant 8 : i32
    %122 = arith.cmpi slt, %121, %c8_i32_66 : i32
    %true_67 = arith.constant true
    %123 = arith.xori %10, %true_67 : i1
    %124 = arith.ori %122, %123 : i1
    %125 = arith.extui %124 : i1 to i32
    %c0_i32_68 = arith.constant 0 : i32
    %126 = arith.cmpi ne, %125, %c0_i32_68 : i32
    scf.if %126 {
      %cst_151 = arith.constant 0x7F800000 : f32
      %267 = vector.broadcast %cst_151 : f32 to vector<16x16xf32>
      %268 = arith.select %120, %267, %107 : vector<16x16xi1>, vector<16x16xf32>
      %c0_152 = arith.constant 0 : index
      %c0_153 = arith.constant 0 : index
      %269 = vector.load %arg8[%c0_152, %c0_153] : memref<16x16xf32, #tpu.memory_space<vmem>>, vector<16x16xf32>
      tpu.vector_store %arg8[%c0_152, %c0_153], %268 {strides = array<i32>} : memref<16x16xf32, #tpu.memory_space<vmem>>, vector<16x16xf32>,
    } else {
    }
    %127 = arith.extui %120 : vector<16x16xi1> to vector<16x16xi32>
    %128 = arith.sitofp %127 : vector<16x16xi32> to vector<16x16xf32>
    %cst_69 = arith.constant dense<0.000000e+00> : vector<4x16xf32>
    %129 = tpu.matmul %3, %128, %cst_69 {dimension_numbers = #tpu.dot_dimension_numbers<[1], [1], [0], [0], [0, 0, 1, 0], [], []>} : vector<4x16xf32>, vector<16x16xf32>, vector<4x16xf32> -> vector<4x16xf32>
    %130 = arith.subf %129, %5 : vector<4x16xf32>
    %c0_70 = arith.constant 0 : index
    %131 = arith.index_cast %c3_i32 : i32 to index
    %c0_71 = arith.constant 0 : index
    %c0_72 = arith.constant 0 : index
    %c0_73 = arith.constant 0 : index
    %132 = vector.load %arg7[%c0_70, %131, %c0_71, %c0_72, %c0_73] : memref<1x8x2x4x16xf32, #tpu.memory_space<vmem>>, vector<1x1x1x4x16xf32>
    %133 = vector.shape_cast %132 : vector<1x1x1x4x16xf32> to vector<4x16xf32>
    %134 = vector.shape_cast %130 : vector<4x16xf32> to vector<1x1x1x4x16xf32>
    tpu.vector_store %arg7[%c0_70, %131, %c0_71, %c0_72, %c0_73], %134 {strides = array<i32>} : memref<1x8x2x4x16xf32, #tpu.memory_space<vmem>>, vector<1x1x1x4x16xf32>,
    %c0_74 = arith.constant 0 : index
    %135 = arith.index_cast %c3_i32 : i32 to index
    %c1_75 = arith.constant 1 : index
    %c0_76 = arith.constant 0 : index
    %c0_77 = arith.constant 0 : index
    %136 = vector.load %arg7[%c0_74, %135, %c1_75, %c0_76, %c0_77] : memref<1x8x2x4x16xf32, #tpu.memory_space<vmem>>, vector<1x1x1x4x16xf32>
    %137 = vector.shape_cast %136 : vector<1x1x1x4x16xf32> to vector<4x16xf32>
    %138 = vector.shape_cast %129 : vector<4x16xf32> to vector<1x1x1x4x16xf32>
    tpu.vector_store %arg7[%c0_74, %135, %c1_75, %c0_76, %c0_77], %138 {strides = array<i32>} : memref<1x8x2x4x16xf32, #tpu.memory_space<vmem>>, vector<1x1x1x4x16xf32>,
    %c4_i32 = arith.constant 4 : i32
    %c0_78 = arith.constant 0 : index
    %c0_79 = arith.constant 0 : index
    %139 = vector.load %arg8[%c0_78, %c0_79] : memref<16x16xf32, #tpu.memory_space<vmem>>, vector<16x16xf32>
    %cst_80 = arith.constant dense<0x7F800000> : vector<16xf32>
    %140 = vector.multi_reduction <minimumf>, %139, %cst_80 [1] : vector<16x16xf32> to vector<16xf32>
    %141 = vector.shape_cast %140 : vector<16xf32> to vector<16x1xf32>
    %142 = vector.broadcast %141 : vector<16x1xf32> to vector<16x16xf32>
    %143 = arith.cmpf ole, %139, %142 : vector<16x16xf32>
    %c16_i32_81 = arith.constant 16 : i32
    %144 = vector.shape_cast %9 : vector<1x16xi32> to vector<1x16xi32>
    %145 = vector.broadcast %144 : vector<1x16xi32> to vector<16x16xi32>
    %146 = vector.broadcast %c16_i32_81 : i32 to vector<16x16xi32>
    %147 = arith.select %143, %145, %146 : vector<16x16xi1>, vector<16x16xi32>
    %cst_82 = arith.constant dense<2147483647> : vector<16xi32>
    %148 = vector.multi_reduction <minsi>, %147, %cst_82 [1] : vector<16x16xi32> to vector<16xi32>
    %149 = vector.shape_cast %148 : vector<16xi32> to vector<16x1xi32>
    %150 = vector.broadcast %9 : vector<1x16xi32> to vector<16x16xi32>
    %151 = vector.broadcast %149 : vector<16x1xi32> to vector<16x16xi32>
    %152 = arith.cmpi eq, %150, %151 : vector<16x16xi32>
    %c1_i32_83 = arith.constant 1 : i32
    %153 = arith.addi %c4_i32, %c1_i32_83 : i32
    %c8_i32_84 = arith.constant 8 : i32
    %154 = arith.cmpi slt, %153, %c8_i32_84 : i32
    %true_85 = arith.constant true
    %155 = arith.xori %10, %true_85 : i1
    %156 = arith.ori %154, %155 : i1
    %157 = arith.extui %156 : i1 to i32
    %c0_i32_86 = arith.constant 0 : i32
    %158 = arith.cmpi ne, %157, %c0_i32_86 : i32
    scf.if %158 {
      %cst_151 = arith.constant 0x7F800000 : f32
      %267 = vector.broadcast %cst_151 : f32 to vector<16x16xf32>
      %268 = arith.select %152, %267, %139 : vector<16x16xi1>, vector<16x16xf32>
      %c0_152 = arith.constant 0 : index
      %c0_153 = arith.constant 0 : index
      %269 = vector.load %arg8[%c0_152, %c0_153] : memref<16x16xf32, #tpu.memory_space<vmem>>, vector<16x16xf32>
      tpu.vector_store %arg8[%c0_152, %c0_153], %268 {strides = array<i32>} : memref<16x16xf32, #tpu.memory_space<vmem>>, vector<16x16xf32>,
    } else {
    }
    %159 = arith.extui %152 : vector<16x16xi1> to vector<16x16xi32>
    %160 = arith.sitofp %159 : vector<16x16xi32> to vector<16x16xf32>
    %cst_87 = arith.constant dense<0.000000e+00> : vector<4x16xf32>
    %161 = tpu.matmul %3, %160, %cst_87 {dimension_numbers = #tpu.dot_dimension_numbers<[1], [1], [0], [0], [0, 0, 1, 0], [], []>} : vector<4x16xf32>, vector<16x16xf32>, vector<4x16xf32> -> vector<4x16xf32>
    %162 = arith.subf %161, %5 : vector<4x16xf32>
    %c0_88 = arith.constant 0 : index
    %163 = arith.index_cast %c4_i32 : i32 to index
    %c0_89 = arith.constant 0 : index
    %c0_90 = arith.constant 0 : index
    %c0_91 = arith.constant 0 : index
    %164 = vector.load %arg7[%c0_88, %163, %c0_89, %c0_90, %c0_91] : memref<1x8x2x4x16xf32, #tpu.memory_space<vmem>>, vector<1x1x1x4x16xf32>
    %165 = vector.shape_cast %164 : vector<1x1x1x4x16xf32> to vector<4x16xf32>
    %166 = vector.shape_cast %162 : vector<4x16xf32> to vector<1x1x1x4x16xf32>
    tpu.vector_store %arg7[%c0_88, %163, %c0_89, %c0_90, %c0_91], %166 {strides = array<i32>} : memref<1x8x2x4x16xf32, #tpu.memory_space<vmem>>, vector<1x1x1x4x16xf32>,
    %c0_92 = arith.constant 0 : index
    %167 = arith.index_cast %c4_i32 : i32 to index
    %c1_93 = arith.constant 1 : index
    %c0_94 = arith.constant 0 : index
    %c0_95 = arith.constant 0 : index
    %168 = vector.load %arg7[%c0_92, %167, %c1_93, %c0_94, %c0_95] : memref<1x8x2x4x16xf32, #tpu.memory_space<vmem>>, vector<1x1x1x4x16xf32>
    %169 = vector.shape_cast %168 : vector<1x1x1x4x16xf32> to vector<4x16xf32>
    %170 = vector.shape_cast %161 : vector<4x16xf32> to vector<1x1x1x4x16xf32>
    tpu.vector_store %arg7[%c0_92, %167, %c1_93, %c0_94, %c0_95], %170 {strides = array<i32>} : memref<1x8x2x4x16xf32, #tpu.memory_space<vmem>>, vector<1x1x1x4x16xf32>,
    %c5_i32 = arith.constant 5 : i32
    %c0_96 = arith.constant 0 : index
    %c0_97 = arith.constant 0 : index
    %171 = vector.load %arg8[%c0_96, %c0_97] : memref<16x16xf32, #tpu.memory_space<vmem>>, vector<16x16xf32>
    %cst_98 = arith.constant dense<0x7F800000> : vector<16xf32>
    %172 = vector.multi_reduction <minimumf>, %171, %cst_98 [1] : vector<16x16xf32> to vector<16xf32>
    %173 = vector.shape_cast %172 : vector<16xf32> to vector<16x1xf32>
    %174 = vector.broadcast %173 : vector<16x1xf32> to vector<16x16xf32>
    %175 = arith.cmpf ole, %171, %174 : vector<16x16xf32>
    %c16_i32_99 = arith.constant 16 : i32
    %176 = vector.shape_cast %9 : vector<1x16xi32> to vector<1x16xi32>
    %177 = vector.broadcast %176 : vector<1x16xi32> to vector<16x16xi32>
    %178 = vector.broadcast %c16_i32_99 : i32 to vector<16x16xi32>
    %179 = arith.select %175, %177, %178 : vector<16x16xi1>, vector<16x16xi32>
    %cst_100 = arith.constant dense<2147483647> : vector<16xi32>
    %180 = vector.multi_reduction <minsi>, %179, %cst_100 [1] : vector<16x16xi32> to vector<16xi32>
    %181 = vector.shape_cast %180 : vector<16xi32> to vector<16x1xi32>
    %182 = vector.broadcast %9 : vector<1x16xi32> to vector<16x16xi32>
    %183 = vector.broadcast %181 : vector<16x1xi32> to vector<16x16xi32>
    %184 = arith.cmpi eq, %182, %183 : vector<16x16xi32>
    %c1_i32_101 = arith.constant 1 : i32
    %185 = arith.addi %c5_i32, %c1_i32_101 : i32
    %c8_i32_102 = arith.constant 8 : i32
    %186 = arith.cmpi slt, %185, %c8_i32_102 : i32
    %true_103 = arith.constant true
    %187 = arith.xori %10, %true_103 : i1
    %188 = arith.ori %186, %187 : i1
    %189 = arith.extui %188 : i1 to i32
    %c0_i32_104 = arith.constant 0 : i32
    %190 = arith.cmpi ne, %189, %c0_i32_104 : i32
    scf.if %190 {
      %cst_151 = arith.constant 0x7F800000 : f32
      %267 = vector.broadcast %cst_151 : f32 to vector<16x16xf32>
      %268 = arith.select %184, %267, %171 : vector<16x16xi1>, vector<16x16xf32>
      %c0_152 = arith.constant 0 : index
      %c0_153 = arith.constant 0 : index
      %269 = vector.load %arg8[%c0_152, %c0_153] : memref<16x16xf32, #tpu.memory_space<vmem>>, vector<16x16xf32>
      tpu.vector_store %arg8[%c0_152, %c0_153], %268 {strides = array<i32>} : memref<16x16xf32, #tpu.memory_space<vmem>>, vector<16x16xf32>,
    } else {
    }
    %191 = arith.extui %184 : vector<16x16xi1> to vector<16x16xi32>
    %192 = arith.sitofp %191 : vector<16x16xi32> to vector<16x16xf32>
    %cst_105 = arith.constant dense<0.000000e+00> : vector<4x16xf32>
    %193 = tpu.matmul %3, %192, %cst_105 {dimension_numbers = #tpu.dot_dimension_numbers<[1], [1], [0], [0], [0, 0, 1, 0], [], []>} : vector<4x16xf32>, vector<16x16xf32>, vector<4x16xf32> -> vector<4x16xf32>
    %194 = arith.subf %193, %5 : vector<4x16xf32>
    %c0_106 = arith.constant 0 : index
    %195 = arith.index_cast %c5_i32 : i32 to index
    %c0_107 = arith.constant 0 : index
    %c0_108 = arith.constant 0 : index
    %c0_109 = arith.constant 0 : index
    %196 = vector.load %arg7[%c0_106, %195, %c0_107, %c0_108, %c0_109] : memref<1x8x2x4x16xf32, #tpu.memory_space<vmem>>, vector<1x1x1x4x16xf32>
    %197 = vector.shape_cast %196 : vector<1x1x1x4x16xf32> to vector<4x16xf32>
    %198 = vector.shape_cast %194 : vector<4x16xf32> to vector<1x1x1x4x16xf32>
    tpu.vector_store %arg7[%c0_106, %195, %c0_107, %c0_108, %c0_109], %198 {strides = array<i32>} : memref<1x8x2x4x16xf32, #tpu.memory_space<vmem>>, vector<1x1x1x4x16xf32>,
    %c0_110 = arith.constant 0 : index
    %199 = arith.index_cast %c5_i32 : i32 to index
    %c1_111 = arith.constant 1 : index
    %c0_112 = arith.constant 0 : index
    %c0_113 = arith.constant 0 : index
    %200 = vector.load %arg7[%c0_110, %199, %c1_111, %c0_112, %c0_113] : memref<1x8x2x4x16xf32, #tpu.memory_space<vmem>>, vector<1x1x1x4x16xf32>
    %201 = vector.shape_cast %200 : vector<1x1x1x4x16xf32> to vector<4x16xf32>
    %202 = vector.shape_cast %193 : vector<4x16xf32> to vector<1x1x1x4x16xf32>
    tpu.vector_store %arg7[%c0_110, %199, %c1_111, %c0_112, %c0_113], %202 {strides = array<i32>} : memref<1x8x2x4x16xf32, #tpu.memory_space<vmem>>, vector<1x1x1x4x16xf32>,
    %c6_i32 = arith.constant 6 : i32
    %c0_114 = arith.constant 0 : index
    %c0_115 = arith.constant 0 : index
    %203 = vector.load %arg8[%c0_114, %c0_115] : memref<16x16xf32, #tpu.memory_space<vmem>>, vector<16x16xf32>
    %cst_116 = arith.constant dense<0x7F800000> : vector<16xf32>
    %204 = vector.multi_reduction <minimumf>, %203, %cst_116 [1] : vector<16x16xf32> to vector<16xf32>
    %205 = vector.shape_cast %204 : vector<16xf32> to vector<16x1xf32>
    %206 = vector.broadcast %205 : vector<16x1xf32> to vector<16x16xf32>
    %207 = arith.cmpf ole, %203, %206 : vector<16x16xf32>
    %c16_i32_117 = arith.constant 16 : i32
    %208 = vector.shape_cast %9 : vector<1x16xi32> to vector<1x16xi32>
    %209 = vector.broadcast %208 : vector<1x16xi32> to vector<16x16xi32>
    %210 = vector.broadcast %c16_i32_117 : i32 to vector<16x16xi32>
    %211 = arith.select %207, %209, %210 : vector<16x16xi1>, vector<16x16xi32>
    %cst_118 = arith.constant dense<2147483647> : vector<16xi32>
    %212 = vector.multi_reduction <minsi>, %211, %cst_118 [1] : vector<16x16xi32> to vector<16xi32>
    %213 = vector.shape_cast %212 : vector<16xi32> to vector<16x1xi32>
    %214 = vector.broadcast %9 : vector<1x16xi32> to vector<16x16xi32>
    %215 = vector.broadcast %213 : vector<16x1xi32> to vector<16x16xi32>
    %216 = arith.cmpi eq, %214, %215 : vector<16x16xi32>
    %c1_i32_119 = arith.constant 1 : i32
    %217 = arith.addi %c6_i32, %c1_i32_119 : i32
    %c8_i32_120 = arith.constant 8 : i32
    %218 = arith.cmpi slt, %217, %c8_i32_120 : i32
    %true_121 = arith.constant true
    %219 = arith.xori %10, %true_121 : i1
    %220 = arith.ori %218, %219 : i1
    %221 = arith.extui %220 : i1 to i32
    %c0_i32_122 = arith.constant 0 : i32
    %222 = arith.cmpi ne, %221, %c0_i32_122 : i32
    scf.if %222 {
      %cst_151 = arith.constant 0x7F800000 : f32
      %267 = vector.broadcast %cst_151 : f32 to vector<16x16xf32>
      %268 = arith.select %216, %267, %203 : vector<16x16xi1>, vector<16x16xf32>
      %c0_152 = arith.constant 0 : index
      %c0_153 = arith.constant 0 : index
      %269 = vector.load %arg8[%c0_152, %c0_153] : memref<16x16xf32, #tpu.memory_space<vmem>>, vector<16x16xf32>
      tpu.vector_store %arg8[%c0_152, %c0_153], %268 {strides = array<i32>} : memref<16x16xf32, #tpu.memory_space<vmem>>, vector<16x16xf32>,
    } else {
    }
    %223 = arith.extui %216 : vector<16x16xi1> to vector<16x16xi32>
    %224 = arith.sitofp %223 : vector<16x16xi32> to vector<16x16xf32>
    %cst_123 = arith.constant dense<0.000000e+00> : vector<4x16xf32>
    %225 = tpu.matmul %3, %224, %cst_123 {dimension_numbers = #tpu.dot_dimension_numbers<[1], [1], [0], [0], [0, 0, 1, 0], [], []>} : vector<4x16xf32>, vector<16x16xf32>, vector<4x16xf32> -> vector<4x16xf32>
    %226 = arith.subf %225, %5 : vector<4x16xf32>
    %c0_124 = arith.constant 0 : index
    %227 = arith.index_cast %c6_i32 : i32 to index
    %c0_125 = arith.constant 0 : index
    %c0_126 = arith.constant 0 : index
    %c0_127 = arith.constant 0 : index
    %228 = vector.load %arg7[%c0_124, %227, %c0_125, %c0_126, %c0_127] : memref<1x8x2x4x16xf32, #tpu.memory_space<vmem>>, vector<1x1x1x4x16xf32>
    %229 = vector.shape_cast %228 : vector<1x1x1x4x16xf32> to vector<4x16xf32>
    %230 = vector.shape_cast %226 : vector<4x16xf32> to vector<1x1x1x4x16xf32>
    tpu.vector_store %arg7[%c0_124, %227, %c0_125, %c0_126, %c0_127], %230 {strides = array<i32>} : memref<1x8x2x4x16xf32, #tpu.memory_space<vmem>>, vector<1x1x1x4x16xf32>,
    %c0_128 = arith.constant 0 : index
    %231 = arith.index_cast %c6_i32 : i32 to index
    %c1_129 = arith.constant 1 : index
    %c0_130 = arith.constant 0 : index
    %c0_131 = arith.constant 0 : index
    %232 = vector.load %arg7[%c0_128, %231, %c1_129, %c0_130, %c0_131] : memref<1x8x2x4x16xf32, #tpu.memory_space<vmem>>, vector<1x1x1x4x16xf32>
    %233 = vector.shape_cast %232 : vector<1x1x1x4x16xf32> to vector<4x16xf32>
    %234 = vector.shape_cast %225 : vector<4x16xf32> to vector<1x1x1x4x16xf32>
    tpu.vector_store %arg7[%c0_128, %231, %c1_129, %c0_130, %c0_131], %234 {strides = array<i32>} : memref<1x8x2x4x16xf32, #tpu.memory_space<vmem>>, vector<1x1x1x4x16xf32>,
    %c7_i32 = arith.constant 7 : i32
    %c0_132 = arith.constant 0 : index
    %c0_133 = arith.constant 0 : index
    %235 = vector.load %arg8[%c0_132, %c0_133] : memref<16x16xf32, #tpu.memory_space<vmem>>, vector<16x16xf32>
    %cst_134 = arith.constant dense<0x7F800000> : vector<16xf32>
    %236 = vector.multi_reduction <minimumf>, %235, %cst_134 [1] : vector<16x16xf32> to vector<16xf32>
    %237 = vector.shape_cast %236 : vector<16xf32> to vector<16x1xf32>
    %238 = vector.broadcast %237 : vector<16x1xf32> to vector<16x16xf32>
    %239 = arith.cmpf ole, %235, %238 : vector<16x16xf32>
    %c16_i32_135 = arith.constant 16 : i32
    %240 = vector.shape_cast %9 : vector<1x16xi32> to vector<1x16xi32>
    %241 = vector.broadcast %240 : vector<1x16xi32> to vector<16x16xi32>
    %242 = vector.broadcast %c16_i32_135 : i32 to vector<16x16xi32>
    %243 = arith.select %239, %241, %242 : vector<16x16xi1>, vector<16x16xi32>
    %cst_136 = arith.constant dense<2147483647> : vector<16xi32>
    %244 = vector.multi_reduction <minsi>, %243, %cst_136 [1] : vector<16x16xi32> to vector<16xi32>
    %245 = vector.shape_cast %244 : vector<16xi32> to vector<16x1xi32>
    %246 = vector.broadcast %9 : vector<1x16xi32> to vector<16x16xi32>
    %247 = vector.broadcast %245 : vector<16x1xi32> to vector<16x16xi32>
    %248 = arith.cmpi eq, %246, %247 : vector<16x16xi32>
    %c1_i32_137 = arith.constant 1 : i32
    %249 = arith.addi %c7_i32, %c1_i32_137 : i32
    %c8_i32_138 = arith.constant 8 : i32
    %250 = arith.cmpi slt, %249, %c8_i32_138 : i32
    %true_139 = arith.constant true
    %251 = arith.xori %10, %true_139 : i1
    %252 = arith.ori %250, %251 : i1
    %253 = arith.extui %252 : i1 to i32
    %c0_i32_140 = arith.constant 0 : i32
    %254 = arith.cmpi ne, %253, %c0_i32_140 : i32
    scf.if %254 {
      %cst_151 = arith.constant 0x7F800000 : f32
      %267 = vector.broadcast %cst_151 : f32 to vector<16x16xf32>
      %268 = arith.select %248, %267, %235 : vector<16x16xi1>, vector<16x16xf32>
      %c0_152 = arith.constant 0 : index
      %c0_153 = arith.constant 0 : index
      %269 = vector.load %arg8[%c0_152, %c0_153] : memref<16x16xf32, #tpu.memory_space<vmem>>, vector<16x16xf32>
      tpu.vector_store %arg8[%c0_152, %c0_153], %268 {strides = array<i32>} : memref<16x16xf32, #tpu.memory_space<vmem>>, vector<16x16xf32>,
    } else {
    }
    %255 = arith.extui %248 : vector<16x16xi1> to vector<16x16xi32>
    %256 = arith.sitofp %255 : vector<16x16xi32> to vector<16x16xf32>
    %cst_141 = arith.constant dense<0.000000e+00> : vector<4x16xf32>
    %257 = tpu.matmul %3, %256, %cst_141 {dimension_numbers = #tpu.dot_dimension_numbers<[1], [1], [0], [0], [0, 0, 1, 0], [], []>} : vector<4x16xf32>, vector<16x16xf32>, vector<4x16xf32> -> vector<4x16xf32>
    %258 = arith.subf %257, %5 : vector<4x16xf32>
    %c0_142 = arith.constant 0 : index
    %259 = arith.index_cast %c7_i32 : i32 to index
    %c0_143 = arith.constant 0 : index
    %c0_144 = arith.constant 0 : index
    %c0_145 = arith.constant 0 : index
    %260 = vector.load %arg7[%c0_142, %259, %c0_143, %c0_144, %c0_145] : memref<1x8x2x4x16xf32, #tpu.memory_space<vmem>>, vector<1x1x1x4x16xf32>
    %261 = vector.shape_cast %260 : vector<1x1x1x4x16xf32> to vector<4x16xf32>
    %262 = vector.shape_cast %258 : vector<4x16xf32> to vector<1x1x1x4x16xf32>
    tpu.vector_store %arg7[%c0_142, %259, %c0_143, %c0_144, %c0_145], %262 {strides = array<i32>} : memref<1x8x2x4x16xf32, #tpu.memory_space<vmem>>, vector<1x1x1x4x16xf32>,
    %c0_146 = arith.constant 0 : index
    %263 = arith.index_cast %c7_i32 : i32 to index
    %c1_147 = arith.constant 1 : index
    %c0_148 = arith.constant 0 : index
    %c0_149 = arith.constant 0 : index
    %264 = vector.load %arg7[%c0_146, %263, %c1_147, %c0_148, %c0_149] : memref<1x8x2x4x16xf32, #tpu.memory_space<vmem>>, vector<1x1x1x4x16xf32>
    %265 = vector.shape_cast %264 : vector<1x1x1x4x16xf32> to vector<4x16xf32>
    %266 = vector.shape_cast %257 : vector<4x16xf32> to vector<1x1x1x4x16xf32>
    tpu.vector_store %arg7[%c0_146, %263, %c1_147, %c0_148, %c0_149], %266 {strides = array<i32>} : memref<1x8x2x4x16xf32, #tpu.memory_space<vmem>>, vector<1x1x1x4x16xf32>,
    %c8_i32_150 = arith.constant 8 : i32
    return
  }
  func.func @transform_0(%arg0: i32, %arg1: i32, %arg2: i32) -> (i32, i32, i32) {
    %c0_i32 = arith.constant 0 : i32
    %c0_i32_0 = arith.constant 0 : i32
    %c0_i32_1 = arith.constant 0 : i32
    return %arg0, %c0_i32, %c0_i32_0 : i32, i32, i32
  }
  func.func @transform_1(%arg0: i32, %arg1: i32, %arg2: i32) -> (i32, i32, i32) {
    %c0_i32 = arith.constant 0 : i32
    %c0_i32_0 = arith.constant 0 : i32
    return %arg0, %c0_i32, %arg1 : i32, i32, i32
  }
  func.func @transform_2(%arg0: i32, %arg1: i32, %arg2: i32) -> (i32, i32, i32) {
    %c0_i32 = arith.constant 0 : i32
    %c0_i32_0 = arith.constant 0 : i32
    %c0_i32_1 = arith.constant 0 : i32
    return %arg0, %c0_i32, %c0_i32_0 : i32, i32, i32
  }
  func.func @transform_3(%arg0: i32, %arg1: i32, %arg2: i32) -> (i32, i32, i32) {
    %c0_i32 = arith.constant 0 : i32
    %c0_i32_0 = arith.constant 0 : i32
    return %arg0, %c0_i32, %arg1 : i32, i32, i32
  }
  func.func @transform_4(%arg0: i32, %arg1: i32, %arg2: i32) -> (i32, i32, i32, i32, i32) {
    %c0_i32 = arith.constant 0 : i32
    %c0_i32_0 = arith.constant 0 : i32
    %c0_i32_1 = arith.constant 0 : i32
    return %arg0, %arg2, %c0_i32, %c0_i32_0, %arg1 : i32, i32, i32, i32, i32
  }
}

</mosaic_0001>

<bundles_post_ra>
// kernel: tpu_custom_call.1
= control target key start
LH: loop header
LB: loop body
LE: loop exit
PB: predicated region body
PF: predicated region fallthrough
CT: control target
= control target key end

     0   :  { %9 = vsyncpa [#allocation4], 0  ;;  %s1720_s0 = inlined_call_operand.vmem [shape: f32[2,3,16], index: 0, kind: input, shape index: {}]   ;;  %s1721_s1 = inlined_call_operand.vmem [shape: f32[2,3,16], index: 1, kind: input, shape index: {}]   ;;  %s1722_s2 = inlined_call_operand.vmem [shape: f32[2,4,16], index: 2, kind: input, shape index: {}]   ;;  %s1723_s3 = inlined_call_operand.vmem [shape: f32[2,4,16], index: 3, kind: input, shape index: {}]   ;;  %s1724_s4 = inlined_call_operand.hbm [shape: f32[2,8,2,4,16], index: 4, kind: output, shape index: {}]  }
   0x1   :  { %11 = vsyncpa [#allocation4 + $0x1], 0  ;;  %s1433_s15 = smov 0   ;;  %s1435_s16 = smov 0  }
   0x2   :  { %s1437_s17 = smov 0   ;;  %s1439_s18 = smov 0  }
   0x3   :  { %s1441_s19 = smov 0   ;;  %s1443_s20 = smov 0  }
   0x4 LB: > { %s1193_s21 = sadd.s32 4294967295, %s1403_s20   ;;  %s1194_s22 = sadd.s32 4294967294, %s1403_s20   ;;  %s1403_s20 = sphi %s1443_s20, %s17_s20   ;;  %s1399_s19 = sphi %s1441_s19, %s1731_s19   ;;  %s1395_s18 = sphi %s1439_s18, %s1730_s18   ;;  %s1391_s17 = sphi %s1437_s17, %s1729_s17   ;;  %s1387_s16 = sphi %s1435_s16, %s1728_s16   ;;  %s1383_s15 = sphi %s1433_s15, %s1727_s15  }
   0x5   : > { %s36_s23 = sadd.s32 1, %s1399_s19  ;;  %s155_s24 = sadd.s32 1, %s1391_s17 }
   0x6   : > { %p38_p0 = scmp.ge.s32.totalorder %s36_s23, 2  ;;  %p165_p1 = scmp.ne.s32.totalorder %s1391_s17, %s1387_s16 }
   0x7   : > { %p166_p2 = scmp.eq.s32.totalorder %s1193_s21, 1  ;;  %p171_p3 = scmp.ne.s32.totalorder %s1387_s16, %s1383_s15 }
   0x8   : > { %s1733_s23 = smov (%p38_p0, %s36_s23), 0  ;;  %p172_p5 = scmp.eq.s32.totalorder %s1194_s22, 1 }
   0x9   : > { %p1473_p4 = por %p166_p2, %p165_p1  ;;  %s148_s26 = ssub.s32 %s1399_s19, %s1733_s23 }
   0xa   : > { %p1197_p6 = scmp.ge.s32.totalorder %s1403_s20, 1  ;;  %p153_p7 = scmp.eq.s32.totalorder %s148_s26, 0 }
   0xb   : > { %p1480_p8 = por %p172_p5, %p171_p3  ;;  %p224_p9 = scmp.lt.s32.totalorder %s1403_s20, 3 }
   0xc   : > { %s1486_s28 = scalar_select %p153_p7, %s1391_s17, %s155_s24  }
   0xd   : > { %p225_p10 = pnand %p1197_p6, %p224_p9 }
   0xe   : > { %p267_p11 = scmp.lt.s32.totalorder (!%p225_p10), %s1395_s18, 1  ;;  %s264_s14 = sand.u32 (!%p225_p10), 1, %s1387_s16  }
   0xf   : > { %228 = sbr.rel (%p225_p10) target bundleno = 3443 (0xd73), region = 36  ;;  %s1198_s26 = sshll.u32 (!%p225_p10), %s264_s14, 6 }
  0x10   : > { %s1345_s21 = scalar_lea.hbm (!%p225_p10), %s1724_s4, 128 }
  0x14   : > { %s268_s29 = scalar_select %p267_p11, %s1395_s18, 1  ;;  %vm337_vm0 = vcmask 1042432   ;;  %vm330_vm1 = vcmask 23552   ;;  %vm365_vm2 = vcmask 124928   ;;  %vm377_vm3 = vcmask 130048  }
  0x15   : > { %v380_v22 = vlaneseq  ;;  %v1405_v54 = vmov 0.0  }
  0x16   : > { %s1490_s30 = sshll.u32 %s268_s29, 2  ;;  %s1639_s29 = scalar_lea.vmem [#allocation3], %s1198_s26 }
  0x17   : > { %s277_s7 = scalar_lea.vmem %s1721_s1, %s1490_s30  ;;  %s270_s10 = scalar_lea.vmem %s1720_s0, %s1490_s30  ;;  %v1504_v23 = vand.u32 127, %v380_v22 }
  0x18   : > { %v297_v0 = vld [vmem:[%s277_s7] sm:$0x7]  ;;  %s281_s13 = scalar_lea.vmem %s1722_s2, %s1490_s30  ;;  %s288_s24 = scalar_lea.vmem %s1723_s3, %s1490_s30 }
  0x19   : > { %298 = vxpose.xlu0.b32.start.end [1/1] (short) (narrow) %v297_v0, 16  ;;  %v290_v1 = vld [vmem:[%s270_s10] sm:$0x7]  ;;  %s1266_s30 = sshll.u32 %s1395_s18, 6  ;;  %s1071_s8 = sshll.u32 %s1639_s29, 4  ;;  %s1072_s8 = int_to_ptr.vmem [resolvable:$true] %s1071_s8 }
  0x1a   : > { %1203 = vmatpush.msk.msra.mxu0 %vm337_vm0, %v290_v1  ;;  %v364_v4 = vmul.f32 %v290_v1, %v290_v1  ;;  %v1526_v59 = vld [vmem:[%s281_s13] sm:$0xf]  ;;  %s1070_s7 = scalar_lea.hbm %s1724_s4, %s1266_s30  ;;  %s1055_s10 = scalar_lea.sflag [#allocation4], %s264_s14 }
  0x1b   : > { %s1073_s9 = sshll.u32 %s1070_s7, 4  ;;  %s1074_s9 = int_to_ptr.hbm [resolvable:$true] %s1073_s9 }
  0x1c   : > { %v366_v5 = vsel %vm365_vm2, %v364_v4, 0.0  ;;  %s1339_s11 = sshra.s32 %s1074_s9, 4  ;;  %s1340_s11 = int_to_ptr.hbm [resolvable:$true] %s1339_s11 }
  0x1d   : > { %v367_v6 = vrot.slane %v366_v5, 4  ;;  %s1341_s12 = scalar_lea.hbm %s1340_s11, 64  ;;  %p1346_p1 = scmp.lt.s32.totalorder %s1340_s11, %s1724_s4 }
  0x1e   : > { %p1342_p12 = scmp.ne.s32.totalorder %s1340_s11, %s1341_s12  ;;  %p1347_p2 = scmp.lt.s32.totalorder %s1345_s21, %s1341_s12 }
  0x1f   : > { %v368_v7 = vadd.f32 %v367_v6, %v366_v5 }
  0x20   : > { %p1343_p13 = pnand %p1342_p12, %p1473_p4  ;;  %p1348_p3 = por %p1347_p2, %p1346_p1 }
  0x21   : > { %v369_v8 = vrot.slane %v368_v7, 2 }
  0x22   : > { %p1344_p0 = pneg %p1343_p13 }
  0x23   : > { %v370_v9 = vadd.f32 %v369_v8, %v368_v7 }
  0x24   : > { %p1349_p5 = pnand %p1348_p3, %p1344_p0 }
  0x25   : > { %v371_v10 = vrot.slane %v370_v9, 1 }
  0x27   : > { %v372_v11 = vadd.f32 %v371_v10, %v370_v9 }
  0xbd   : > { %v314_v2 = vpop.trf.xlu0 }
  0xbe   : > { %1204 = vmatmul.msk.f32.vlgmr.msra.gmra.mxu0 %vm330_vm1, %v314_v2 }
  0xc5   : > { %v315_v3 = vpop.trf.xlu0 }
  0xc6   : > { %1205 = vmatmul.msk.f32.gmra.mxu0 %vm330_vm1, %v315_v3 }
 0x13b   : > { %v358_v12 = vpop.f32.mrf.mxu0 }
 0x13c   : > { %v373_v13 = vmul.f32 2.0, %v358_v12 }
 0x13e   : > { %v375_v14 = vsub.f32 %v372_v11, %v373_v13 }
 0x140   : > { %378 = vst.msk [vmem:[#allocation2] sm:$0xff] %vm377_vm3, %v375_v14 }
 0x143   : > { %v361_v15 = vpop.f32.mrf.mxu0 }
 0x144   : > { %v374_v16 = vmul.f32 2.0, %v361_v15 }
 0x146   : > { %v376_v17 = vsub.f32 %v372_v11, %v374_v16 }
 0x147   : > { %v382_v18 = vld [vmem:[#allocation2] sm:$0xff] }
 0x148   : > { %379 = vst.msk [vmem:[#allocation2 + $0x8] sm:$0xff] %vm377_vm3, %v376_v17  ;;  %v385_v19 = vsel %vm377_vm3, %v382_v18, inf }
 0x149   : > { %386 = vmin.xlane.f32.xlu1 %v385_v19 }
 0x14f   : > { %v383_v20 = vld [vmem:[#allocation2 + $0x8] sm:$0xff] }
 0x150   : > { %v388_v21 = vsel %vm377_vm3, %v383_v20, inf }
 0x151   : > { %389 = vmin.xlane.f32.xlu0 %v388_v21 }
 0x1bc   : > { %v387_v24 = vpop.xlane.xlu1 %386 }
 0x1bd   : > { %vm391_vm4 = vcmp.le.f32.partialorder %v382_v18, %v387_v24 }
 0x1be   : > { %v393_v25 = vsel %vm391_vm4, %v1504_v23, 16 }
 0x1bf   : > { %v395_v26 = vsel %vm377_vm3, %v393_v25, 2147483647 }
 0x1c0   : > { %v397_v27 = vshra.s32 %v395_v26, 16  ;;  %v396_v34 = vand.u32 65535, %v395_v26 }
 0x1c2   : > { %v399_v28 = vcvt.s32.f32 %v397_v27  ;;  %v398_v36 = vcvt.s32.f32 %v396_v34 }
 0x1c4   : > { %400 = vmin.xlane.f32.xlu2 %v399_v28  ;;  %v390_v29 = vpop.xlane.xlu0 %389 }
 0x1c5   : > { %vm392_vm5 = vcmp.le.f32.partialorder %v383_v20, %v390_v29 }
 0x1c6   : > { %v394_v30 = vsel %vm392_vm5, %v1504_v23, 16 }
 0x1c7   : > { %v410_v31 = vsel %vm377_vm3, %v394_v30, 2147483647 }
 0x1c8   : > { %v412_v32 = vshra.s32 %v410_v31, 16  ;;  %v411_v38 = vand.u32 65535, %v410_v31 }
 0x1ca   : > { %v414_v33 = vcvt.s32.f32 %v412_v32  ;;  %v413_v40 = vcvt.s32.f32 %v411_v38 }
 0x1cc   : > { %415 = vmin.xlane.f32.xlu1 %v414_v33 }
 0x237   : > { %v401_v35 = vpop.xlane.xlu2 %400 }
 0x238   : > { %vm402_vm6 = vcmp.eq.f32.partialorder %v399_v28, %v401_v35  ;;  %v407_v42 = vcvt.f32.s32 %v401_v35 }
 0x239   : > { %v403_v37 = vsel %vm402_vm6, %v398_v36, inf }
 0x23a   : > { %404 = vmin.xlane.f32.xlu1 %v403_v37  ;;  %v408_v44 = vshll.u32 %v407_v42, 16 }
 0x23f   : > { %v416_v39 = vpop.xlane.xlu1 %415 }
 0x240   : > { %vm417_vm7 = vcmp.eq.f32.partialorder %v414_v33, %v416_v39  ;;  %v422_v47 = vcvt.f32.s32 %v416_v39 }
 0x241   : > { %v418_v41 = vsel %vm417_vm7, %v413_v40, inf }
 0x242   : > { %419 = vmin.xlane.f32.xlu2 %v418_v41  ;;  %v423_v50 = vshll.u32 %v422_v47, 16 }
 0x2ad   : > { %v405_v43 = vpop.xlane.xlu1 %404 }
 0x2ae   : > { %v406_v45 = vcvt.f32.s32 %v405_v43 }
 0x2b0   : > { %v409_v46 = vadd.s32 %v408_v44, %v406_v45 }
 0x2b2   : > { %vm425_vm8 = vcmp.eq.s32.totalorder %v1504_v23, %v409_v46 }
 0x2b3   : > { %v427_v48 = vsel %vm425_vm8, inf, %v382_v18  ;;  %v1206_v58 = vsel %vm425_vm8, 1.0, %v1405_v54 }
 0x2b4   : > { %429 = vst.msk [vmem:[#allocation2] sm:$0xff] %vm377_vm3, %v427_v48 }
 0x2b5   : > { %v420_v49 = vpop.xlane.xlu2 %419 }
 0x2b6   : > { %v421_v51 = vcvt.f32.s32 %v420_v49 }
 0x2b8   : > { %v424_v52 = vadd.s32 %v423_v50, %v421_v51 }
 0x2ba   : > { %vm426_vm9 = vcmp.eq.s32.totalorder %v1504_v23, %v424_v52 }
 0x2bb   : > { %v428_v53 = vsel %vm426_vm9, inf, %v383_v20  ;;  %v1207_v55 = vsel %vm426_vm9, 1.0, %v1405_v54  ;;  %v469_v56 = vld [vmem:[#allocation2] sm:$0xff] }
 0x2bc   : > { %430 = vst.msk [vmem:[#allocation2 + $0x8] sm:$0xff] %vm377_vm3, %v428_v53  ;;  %1208 = vmatpush.xpose.msk.msra.mxu1 %vm377_vm3, %v1207_v55  ;;  %v471_v57 = vsel %vm377_vm3, %v469_v56, inf }
 0x2bd   : > { %472 = vmin.xlane.f32.xlu1 %v471_v57 }
 0x2c0   : > { %1209 = vmatpush.xpose.msk.msra.mxu1 %vm377_vm3, %v1206_v58 }
 0x2c3   : > { %v470_v60 = vld [vmem:[#allocation2 + $0x8] sm:$0xff]  ;;  %1210 = vmatmul.msk.f32.vlgmr.msra.gmra.mxu1 %vm377_vm3, %v1526_v59 }
 0x2c4   : > { %v474_v61 = vsel %vm377_vm3, %v470_v60, inf }
 0x2c5   : > { %475 = vmin.xlane.f32.xlu2 %v474_v61 }
 0x330   : > { %v473_v62 = vpop.xlane.xlu1 %472 }
 0x331   : > { %vm477_vm10 = vcmp.le.f32.partialorder %v469_v56, %v473_v62 }
 0x332   : > { %v479_v63 = vsel %vm477_vm10, %v1504_v23, 16 }
 0x333   : > { %v481_v0 = vsel %vm377_vm3, %v479_v63, 2147483647 }
 0x334   : > { %v483_v1 = vshra.s32 %v481_v0, 16  ;;  %v482_v8 = vand.u32 65535, %v481_v0 }
 0x336   : > { %v485_v2 = vcvt.s32.f32 %v483_v1  ;;  %v484_v10 = vcvt.s32.f32 %v482_v8 }
 0x338   : > { %486 = vmin.xlane.f32.xlu1 %v485_v2  ;;  %v476_v3 = vpop.xlane.xlu2 %475 }
 0x339   : > { %vm478_vm11 = vcmp.le.f32.partialorder %v470_v60, %v476_v3 }
 0x33a   : > { %v480_v4 = vsel %vm478_vm11, %v1504_v23, 16 }
 0x33b   : > { %v496_v5 = vsel %vm377_vm3, %v480_v4, 2147483647 }
 0x33c   : > { %v498_v6 = vshra.s32 %v496_v5, 16  ;;  %v497_v12 = vand.u32 65535, %v496_v5 }
 0x33e   : > { %v500_v7 = vcvt.s32.f32 %v498_v6  ;;  %v499_v14 = vcvt.s32.f32 %v497_v12 }
 0x340   : > { %501 = vmin.xlane.f32.xlu2 %v500_v7 }
 0x3ab   : > { %v487_v9 = vpop.xlane.xlu1 %486 }
 0x3ac   : > { %vm488_vm12 = vcmp.eq.f32.partialorder %v485_v2, %v487_v9  ;;  %v493_v16 = vcvt.f32.s32 %v487_v9 }
 0x3ad   : > { %v489_v11 = vsel %vm488_vm12, %v484_v10, inf }
 0x3ae   : > { %490 = vmin.xlane.f32.xlu1 %v489_v11  ;;  %v494_v18 = vshll.u32 %v493_v16, 16 }
 0x3b3   : > { %v502_v13 = vpop.xlane.xlu2 %501 }
 0x3b4   : > { %vm503_vm13 = vcmp.eq.f32.partialorder %v500_v7, %v502_v13  ;;  %v508_v21 = vcvt.f32.s32 %v502_v13 }
 0x3b5   : > { %v504_v15 = vsel %vm503_vm13, %v499_v14, inf }
 0x3b6   : > { %505 = vmin.xlane.f32.xlu2 %v504_v15  ;;  %v509_v25 = vshll.u32 %v508_v21, 16 }
 0x421   : > { %v491_v17 = vpop.xlane.xlu1 %490 }
 0x422   : > { %v492_v19 = vcvt.f32.s32 %v491_v17 }
 0x424   : > { %v495_v20 = vadd.s32 %v494_v18, %v492_v19 }
 0x426   : > { %vm511_vm14 = vcmp.eq.s32.totalorder %v1504_v23, %v495_v20 }
 0x427   : > { %v513_v22 = vsel %vm511_vm14, inf, %v469_v56  ;;  %v1212_v32 = vsel %vm511_vm14, 1.0, %v1405_v54 }
 0x428   : > { %515 = vst.msk [vmem:[#allocation2] sm:$0xff] %vm377_vm3, %v513_v22 }
 0x429   : > { %v506_v24 = vpop.xlane.xlu2 %505 }
 0x42a   : > { %v507_v26 = vcvt.f32.s32 %v506_v24 }
 0x42c   : > { %v510_v27 = vadd.s32 %v509_v25, %v507_v26 }
 0x42e   : > { %vm512_vm15 = vcmp.eq.s32.totalorder %v1504_v23, %v510_v27 }
 0x42f   : > { %v514_v28 = vsel %vm512_vm15, inf, %v470_v60  ;;  %v1213_v29 = vsel %vm512_vm15, 1.0, %v1405_v54  ;;  %v552_v30 = vld [vmem:[#allocation2] sm:$0xff] }
 0x430   : > { %516 = vst.msk [vmem:[#allocation2 + $0x8] sm:$0xff] %vm377_vm3, %v514_v28  ;;  %1214 = vmatpush.xpose.msk.msra.mxu2 %vm377_vm3, %v1213_v29  ;;  %v554_v31 = vsel %vm377_vm3, %v552_v30, inf }
 0x431   : > { %555 = vmin.xlane.f32.xlu1 %v554_v31 }
 0x434   : > { %1215 = vmatpush.xpose.msk.msra.mxu2 %vm377_vm3, %v1212_v32 }
 0x437   : > { %v553_v33 = vld [vmem:[#allocation2 + $0x8] sm:$0xff]  ;;  %1216 = vmatmul.msk.f32.vlgmr.msra.gmra.mxu2 %vm377_vm3, %v1526_v59 }
 0x438   : > { %v557_v34 = vsel %vm377_vm3, %v553_v33, inf }
 0x439   : > { %558 = vmin.xlane.f32.xlu2 %v557_v34 }
 0x4a4   : > { %v556_v35 = vpop.xlane.xlu1 %555 }
 0x4a5   : > { %vm560_vm0 = vcmp.le.f32.partialorder %v552_v30, %v556_v35 }
 0x4a6   : > { %v562_v36 = vsel %vm560_vm0, %v1504_v23, 16 }
 0x4a7   : > { %v564_v37 = vsel %vm377_vm3, %v562_v36, 2147483647 }
 0x4a8   : > { %v566_v38 = vshra.s32 %v564_v37, 16  ;;  %v565_v45 = vand.u32 65535, %v564_v37 }
 0x4aa   : > { %v568_v39 = vcvt.s32.f32 %v566_v38  ;;  %v567_v47 = vcvt.s32.f32 %v565_v45 }
 0x4ac   : > { %569 = vmin.xlane.f32.xlu1 %v568_v39  ;;  %v559_v40 = vpop.xlane.xlu2 %558 }
 0x4ad   : > { %vm561_vm1 = vcmp.le.f32.partialorder %v553_v33, %v559_v40 }
 0x4ae   : > { %v563_v41 = vsel %vm561_vm1, %v1504_v23, 16 }
 0x4af   : > { %v579_v42 = vsel %vm377_vm3, %v563_v41, 2147483647 }
 0x4b0   : > { %v581_v43 = vshra.s32 %v579_v42, 16  ;;  %v580_v49 = vand.u32 65535, %v579_v42 }
 0x4b2   : > { %v583_v44 = vcvt.s32.f32 %v581_v43  ;;  %v582_v51 = vcvt.s32.f32 %v580_v49 }
 0x4b4   : > { %584 = vmin.xlane.f32.xlu2 %v583_v44 }
 0x51f   : > { %v570_v46 = vpop.xlane.xlu1 %569 }
 0x520   : > { %vm571_vm2 = vcmp.eq.f32.partialorder %v568_v39, %v570_v46  ;;  %v576_v53 = vcvt.f32.s32 %v570_v46 }
 0x521   : > { %v572_v48 = vsel %vm571_vm2, %v567_v47, inf }
 0x522   : > { %573 = vmin.xlane.f32.xlu1 %v572_v48  ;;  %v577_v56 = vshll.u32 %v576_v53, 16 }
 0x527   : > { %v585_v50 = vpop.xlane.xlu2 %584 }
 0x528   : > { %vm586_vm4 = vcmp.eq.f32.partialorder %v583_v44, %v585_v50  ;;  %v591_v60 = vcvt.f32.s32 %v585_v50 }
 0x529   : > { %v587_v52 = vsel %vm586_vm4, %v582_v51, inf }
 0x52a   : > { %588 = vmin.xlane.f32.xlu2 %v587_v52  ;;  %v592_v63 = vshll.u32 %v591_v60, 16 }
 0x595   : > { %v574_v55 = vpop.xlane.xlu1 %573 }
 0x596   : > { %v575_v57 = vcvt.f32.s32 %v574_v55 }
 0x598   : > { %v578_v58 = vadd.s32 %v577_v56, %v575_v57 }
 0x59a   : > { %vm594_vm5 = vcmp.eq.s32.totalorder %v1504_v23, %v578_v58 }
 0x59b   : > { %v596_v61 = vsel %vm594_vm5, inf, %v552_v30  ;;  %v1219_v6 = vsel %vm594_vm5, 1.0, %v1405_v54 }
 0x59c   : > { %598 = vst.msk [vmem:[#allocation2] sm:$0xff] %vm377_vm3, %v596_v61 }
 0x59d   : > { %v589_v62 = vpop.xlane.xlu2 %588 }
 0x59e   : > { %v590_v0 = vcvt.f32.s32 %v589_v62 }
 0x5a0   : > { %v593_v1 = vadd.s32 %v592_v63, %v590_v0 }
 0x5a2   : > { %vm595_vm6 = vcmp.eq.s32.totalorder %v1504_v23, %v593_v1 }
 0x5a3   : > { %v597_v2 = vsel %vm595_vm6, inf, %v553_v33  ;;  %v1220_v3 = vsel %vm595_vm6, 1.0, %v1405_v54  ;;  %v635_v4 = vld [vmem:[#allocation2] sm:$0xff] }
 0x5a4   : > { %599 = vst.msk [vmem:[#allocation2 + $0x8] sm:$0xff] %vm377_vm3, %v597_v2  ;;  %1221 = vmatpush.xpose.msk.msra.mxu3 %vm377_vm3, %v1220_v3  ;;  %v637_v5 = vsel %vm377_vm3, %v635_v4, inf }
 0x5a5   : > { %638 = vmin.xlane.f32.xlu1 %v637_v5 }
 0x5a8   : > { %1222 = vmatpush.xpose.msk.msra.mxu3 %vm377_vm3, %v1219_v6 }
 0x5ab   : > { %v636_v7 = vld [vmem:[#allocation2 + $0x8] sm:$0xff]  ;;  %1223 = vmatmul.msk.f32.vlgmr.msra.gmra.mxu3 %vm377_vm3, %v1526_v59 }
 0x5ac   : > { %v640_v8 = vsel %vm377_vm3, %v636_v7, inf }
 0x5ad   : > { %641 = vmin.xlane.f32.xlu2 %v640_v8 }
 0x618   : > { %v639_v9 = vpop.xlane.xlu1 %638 }
 0x619   : > { %vm643_vm7 = vcmp.le.f32.partialorder %v635_v4, %v639_v9 }
 0x61a   : > { %v645_v10 = vsel %vm643_vm7, %v1504_v23, 16 }
 0x61b   : > { %v647_v11 = vsel %vm377_vm3, %v645_v10, 2147483647 }
 0x61c   : > { %v649_v12 = vshra.s32 %v647_v11, 16  ;;  %v648_v19 = vand.u32 65535, %v647_v11 }
 0x61e   : > { %v651_v13 = vcvt.s32.f32 %v649_v12  ;;  %v650_v21 = vcvt.s32.f32 %v648_v19 }
 0x620   : > { %652 = vmin.xlane.f32.xlu1 %v651_v13  ;;  %v642_v14 = vpop.xlane.xlu2 %641 }
 0x621   : > { %vm644_vm8 = vcmp.le.f32.partialorder %v636_v7, %v642_v14 }
 0x622   : > { %v646_v15 = vsel %vm644_vm8, %v1504_v23, 16 }
 0x623   : > { %v662_v16 = vsel %vm377_vm3, %v646_v15, 2147483647 }
 0x624   : > { %v664_v17 = vshra.s32 %v662_v16, 16  ;;  %v663_v24 = vand.u32 65535, %v662_v16 }
 0x626   : > { %v666_v18 = vcvt.s32.f32 %v664_v17  ;;  %v665_v26 = vcvt.s32.f32 %v663_v24 }
 0x628   : > { %667 = vmin.xlane.f32.xlu2 %v666_v18 }
 0x693   : > { %v653_v20 = vpop.xlane.xlu1 %652 }
 0x694   : > { %vm654_vm9 = vcmp.eq.f32.partialorder %v651_v13, %v653_v20  ;;  %v659_v28 = vcvt.f32.s32 %v653_v20 }
 0x695   : > { %v655_v22 = vsel %vm654_vm9, %v650_v21, inf }
 0x696   : > { %656 = vmin.xlane.f32.xlu1 %v655_v22  ;;  %v660_v30 = vshll.u32 %v659_v28, 16 }
 0x69b   : > { %v668_v25 = vpop.xlane.xlu2 %667 }
 0x69c   : > { %vm669_vm10 = vcmp.eq.f32.partialorder %v666_v18, %v668_v25  ;;  %v674_v33 = vcvt.f32.s32 %v668_v25 }
 0x69d   : > { %v670_v27 = vsel %vm669_vm10, %v665_v26, inf }
 0x69e   : > { %671 = vmin.xlane.f32.xlu2 %v670_v27  ;;  %v675_v36 = vshll.u32 %v674_v33, 16 }
 0x709   : > { %v657_v29 = vpop.xlane.xlu1 %656 }
 0x70a   : > { %v658_v31 = vcvt.f32.s32 %v657_v29 }
 0x70c   : > { %v661_v32 = vadd.s32 %v660_v30, %v658_v31 }
 0x70e   : > { %vm677_vm11 = vcmp.eq.s32.totalorder %v1504_v23, %v661_v32 }
 0x70f   : > { %v679_v34 = vsel %vm677_vm11, inf, %v635_v4  ;;  %v1226_v43 = vsel %vm677_vm11, 1.0, %v1405_v54 }
 0x710   : > { %681 = vst.msk [vmem:[#allocation2] sm:$0xff] %vm377_vm3, %v679_v34 }
 0x711   : > { %v672_v35 = vpop.xlane.xlu2 %671 }
 0x712   : > { %v673_v37 = vcvt.f32.s32 %v672_v35 }
 0x714   : > { %v676_v38 = vadd.s32 %v675_v36, %v673_v37 }
 0x716   : > { %vm678_vm12 = vcmp.eq.s32.totalorder %v1504_v23, %v676_v38 }
 0x717   : > { %v680_v39 = vsel %vm678_vm12, inf, %v636_v7  ;;  %v1227_v40 = vsel %vm678_vm12, 1.0, %v1405_v54  ;;  %v718_v41 = vld [vmem:[#allocation2] sm:$0xff] }
 0x718   : > { %682 = vst.msk [vmem:[#allocation2 + $0x8] sm:$0xff] %vm377_vm3, %v680_v39  ;;  %1228 = vmatpush.xpose.msk.msrb.mxu1 %vm377_vm3, %v1227_v40  ;;  %v720_v42 = vsel %vm377_vm3, %v718_v41, inf }
 0x719   : > { %721 = vmin.xlane.f32.xlu1 %v720_v42 }
 0x71c   : > { %1229 = vmatpush.xpose.msk.msrb.mxu1 %vm377_vm3, %v1226_v43 }
 0x71f   : > { %v719_v44 = vld [vmem:[#allocation2 + $0x8] sm:$0xff]  ;;  %1230 = vmatmul.msk.f32.vlgmr.msrb.gmra.mxu1 %vm377_vm3, %v1526_v59 }
 0x720   : > { %v723_v45 = vsel %vm377_vm3, %v719_v44, inf }
 0x721   : > { %724 = vmin.xlane.f32.xlu2 %v723_v45 }
 0x78c   : > { %v722_v46 = vpop.xlane.xlu1 %721 }
 0x78d   : > { %vm726_vm13 = vcmp.le.f32.partialorder %v718_v41, %v722_v46 }
 0x78e   : > { %v728_v47 = vsel %vm726_vm13, %v1504_v23, 16 }
 0x78f   : > { %v730_v48 = vsel %vm377_vm3, %v728_v47, 2147483647 }
 0x790   : > { %v732_v49 = vshra.s32 %v730_v48, 16  ;;  %v731_v57 = vand.u32 65535, %v730_v48 }
 0x792   : > { %v734_v50 = vcvt.s32.f32 %v732_v49  ;;  %v733_v60 = vcvt.s32.f32 %v731_v57 }
 0x794   : > { %735 = vmin.xlane.f32.xlu1 %v734_v50  ;;  %v725_v51 = vpop.xlane.xlu2 %724 }
 0x795   : > { %vm727_vm14 = vcmp.le.f32.partialorder %v719_v44, %v725_v51 }
 0x796   : > { %v729_v52 = vsel %vm727_vm14, %v1504_v23, 16 }
 0x797   : > { %v745_v53 = vsel %vm377_vm3, %v729_v52, 2147483647 }
 0x798   : > { %v747_v55 = vshra.s32 %v745_v53, 16  ;;  %v746_v62 = vand.u32 65535, %v745_v53 }
 0x79a   : > { %v749_v56 = vcvt.s32.f32 %v747_v55  ;;  %v748_v0 = vcvt.s32.f32 %v746_v62 }
 0x79c   : > { %750 = vmin.xlane.f32.xlu2 %v749_v56 }
 0x807   : > { %v736_v58 = vpop.xlane.xlu1 %735 }
 0x808   : > { %vm737_vm15 = vcmp.eq.f32.partialorder %v734_v50, %v736_v58  ;;  %v742_v2 = vcvt.f32.s32 %v736_v58 }
 0x809   : > { %v738_v61 = vsel %vm737_vm15, %v733_v60, inf }
 0x80a   : > { %739 = vmin.xlane.f32.xlu1 %v738_v61  ;;  %v743_v4 = vshll.u32 %v742_v2, 16 }
 0x80f   : > { %v751_v63 = vpop.xlane.xlu2 %750 }
 0x810   : > { %vm752_vm0 = vcmp.eq.f32.partialorder %v749_v56, %v751_v63  ;;  %v757_v7 = vcvt.f32.s32 %v751_v63 }
 0x811   : > { %v753_v1 = vsel %vm752_vm0, %v748_v0, inf }
 0x812   : > { %754 = vmin.xlane.f32.xlu2 %v753_v1  ;;  %v758_v10 = vshll.u32 %v757_v7, 16 }
 0x87d   : > { %v740_v3 = vpop.xlane.xlu1 %739 }
 0x87e   : > { %v741_v5 = vcvt.f32.s32 %v740_v3 }
 0x880   : > { %v744_v6 = vadd.s32 %v743_v4, %v741_v5 }
 0x882   : > { %vm760_vm1 = vcmp.eq.s32.totalorder %v1504_v23, %v744_v6 }
 0x883   : > { %v762_v8 = vsel %vm760_vm1, inf, %v718_v41  ;;  %v1233_v17 = vsel %vm760_vm1, 1.0, %v1405_v54 }
 0x884   : > { %764 = vst.msk [vmem:[#allocation2] sm:$0xff] %vm377_vm3, %v762_v8 }
 0x885   : > { %v755_v9 = vpop.xlane.xlu2 %754 }
 0x886   : > { %v756_v11 = vcvt.f32.s32 %v755_v9 }
 0x888   : > { %v759_v12 = vadd.s32 %v758_v10, %v756_v11 }
 0x88a   : > { %vm761_vm2 = vcmp.eq.s32.totalorder %v1504_v23, %v759_v12 }
 0x88b   : > { %v763_v13 = vsel %vm761_vm2, inf, %v719_v44  ;;  %v1234_v14 = vsel %vm761_vm2, 1.0, %v1405_v54  ;;  %v801_v15 = vld [vmem:[#allocation2] sm:$0xff] }
 0x88c   : > { %765 = vst.msk [vmem:[#allocation2 + $0x8] sm:$0xff] %vm377_vm3, %v763_v13  ;;  %1235 = vmatpush.xpose.msk.msrb.mxu2 %vm377_vm3, %v1234_v14  ;;  %v803_v16 = vsel %vm377_vm3, %v801_v15, inf }
 0x88d   : > { %804 = vmin.xlane.f32.xlu1 %v803_v16 }
 0x890   : > { %1236 = vmatpush.xpose.msk.msrb.mxu2 %vm377_vm3, %v1233_v17 }
 0x893   : > { %v802_v18 = vld [vmem:[#allocation2 + $0x8] sm:$0xff]  ;;  %1237 = vmatmul.msk.f32.vlgmr.msrb.gmra.mxu2 %vm377_vm3, %v1526_v59 }
 0x894   : > { %v806_v19 = vsel %vm377_vm3, %v802_v18, inf }
 0x895   : > { %807 = vmin.xlane.f32.xlu2 %v806_v19 }
 0x900   : > { %v805_v20 = vpop.xlane.xlu1 %804 }
 0x901   : > { %vm809_vm4 = vcmp.le.f32.partialorder %v801_v15, %v805_v20 }
 0x902   : > { %v811_v21 = vsel %vm809_vm4, %v1504_v23, 16 }
 0x903   : > { %v813_v22 = vsel %vm377_vm3, %v811_v21, 2147483647 }
 0x904   : > { %v815_v24 = vshra.s32 %v813_v22, 16  ;;  %v814_v31 = vand.u32 65535, %v813_v22 }
 0x906   : > { %v817_v25 = vcvt.s32.f32 %v815_v24  ;;  %v816_v33 = vcvt.s32.f32 %v814_v31 }
 0x908   : > { %818 = vmin.xlane.f32.xlu1 %v817_v25  ;;  %v808_v26 = vpop.xlane.xlu2 %807 }
 0x909   : > { %vm810_vm5 = vcmp.le.f32.partialorder %v802_v18, %v808_v26 }
 0x90a   : > { %v812_v27 = vsel %vm810_vm5, %v1504_v23, 16  ;;  %vm465_vm5 = vcmask 125952  }
 0x90b   : > { %v828_v28 = vsel %vm377_vm3, %v812_v27, 2147483647 }
 0x90c   : > { %v830_v29 = vshra.s32 %v828_v28, 16  ;;  %v829_v35 = vand.u32 65535, %v828_v28 }
 0x90e   : > { %v832_v30 = vcvt.s32.f32 %v830_v29  ;;  %v831_v37 = vcvt.s32.f32 %v829_v35 }
 0x910   : > { %833 = vmin.xlane.f32.xlu2 %v832_v30 }
 0x97b   : > { %v819_v32 = vpop.xlane.xlu1 %818 }
 0x97c   : > { %vm820_vm6 = vcmp.eq.f32.partialorder %v817_v25, %v819_v32  ;;  %v825_v39 = vcvt.f32.s32 %v819_v32 }
 0x97d   : > { %v821_v34 = vsel %vm820_vm6, %v816_v33, inf }
 0x97e   : > { %822 = vmin.xlane.f32.xlu0 %v821_v34  ;;  %v826_v41 = vshll.u32 %v825_v39, 16 }
 0x983   : > { %v834_v36 = vpop.xlane.xlu2 %833 }
 0x984   : > { %vm835_vm7 = vcmp.eq.f32.partialorder %v832_v30, %v834_v36  ;;  %v840_v44 = vcvt.f32.s32 %v834_v36 }
 0x985   : > { %v836_v38 = vsel %vm835_vm7, %v831_v37, inf }
 0x986   : > { %837 = vmin.xlane.f32.xlu2 %v836_v38  ;;  %v841_v47 = vshll.u32 %v840_v44, 16 }
 0x9f1   : > { %v823_v40 = vpop.xlane.xlu0 %822 }
 0x9f2   : > { %v824_v42 = vcvt.f32.s32 %v823_v40 }
 0x9f4   : > { %v827_v43 = vadd.s32 %v826_v41, %v824_v42 }
 0x9f6   : > { %vm843_vm8 = vcmp.eq.s32.totalorder %v1504_v23, %v827_v43 }
 0x9f7   : > { %v845_v45 = vsel %vm843_vm8, inf, %v801_v15  ;;  %v1240_v55 = vsel %vm843_vm8, 1.0, %v1405_v54 }
 0x9f8   : > { %847 = vst.msk [vmem:[#allocation2] sm:$0xff] %vm377_vm3, %v845_v45 }
 0x9f9   : > { %v838_v46 = vpop.xlane.xlu2 %837 }
 0x9fa   : > { %v839_v48 = vcvt.f32.s32 %v838_v46 }
 0x9fc   : > { %v842_v49 = vadd.s32 %v841_v47, %v839_v48 }
 0x9fe   : > { %vm844_vm9 = vcmp.eq.s32.totalorder %v1504_v23, %v842_v49 }
 0x9ff   : > { %v846_v50 = vsel %vm844_vm9, inf, %v802_v18  ;;  %v1241_v51 = vsel %vm844_vm9, 1.0, %v1405_v54  ;;  %v884_v52 = vld [vmem:[#allocation2] sm:$0xff] }
 0xa00   : > { %848 = vst.msk [vmem:[#allocation2 + $0x8] sm:$0xff] %vm377_vm3, %v846_v50  ;;  %1242 = vmatpush.xpose.msk.msrb.mxu3 %vm377_vm3, %v1241_v51  ;;  %v886_v53 = vsel %vm377_vm3, %v884_v52, inf  ;;  %v292_v50 = vld [vmem:[%s288_s24] sm:$0xf]  ;;  %v461_v51 = vpop.f32.mrf.mxu1 }
 0xa01   : > { %887 = vmin.xlane.f32.xlu2 %v886_v53  ;;  %v464_v53 = vsub.f32 %v461_v51, %v292_v50  ;;  %1211 = vst.msk [vmem:[%s1639_s29 + $0x4] sm:$0xf] %vm465_vm5, %v461_v51 }
 0xa03   : > { %466 = vst.msk [vmem:[%s1639_s29] sm:$0xf] %vm465_vm5, %v464_v53 }
 0xa04   : > { %1243 = vmatpush.xpose.msk.msrb.mxu3 %vm377_vm3, %v1240_v55 }
 0xa07   : > { %v885_v56 = vld [vmem:[#allocation2 + $0x8] sm:$0xff]  ;;  %1244 = vmatmul.msk.f32.vlgmr.msrb.gmra.mxu3 %vm377_vm3, %v1526_v59 }
 0xa08   : > { %v889_v57 = vsel %vm377_vm3, %v885_v56, inf }
 0xa09   : > { %890 = vmin.xlane.f32.xlu1 %v889_v57 }
 0xa74   : > { %v888_v58 = vpop.xlane.xlu2 %887 }
 0xa75   : > { %vm892_vm10 = vcmp.le.f32.partialorder %v884_v52, %v888_v58 }
 0xa76   : > { %v894_v60 = vsel %vm892_vm10, %v1504_v23, 16 }
 0xa77   : > { %v896_v61 = vsel %vm377_vm3, %v894_v60, 2147483647 }
 0xa78   : > { %v898_v62 = vshra.s32 %v896_v61, 16  ;;  %v897_v5 = vand.u32 65535, %v896_v61  ;;  %v710_v61 = vpop.f32.mrf.mxu1 }
 0xa79   : > { %1232 = vst.msk [vmem:[%s1639_s29 + $0x1c] sm:$0xf] %vm465_vm5, %v710_v61 }
 0xa7a   : > { %v900_v63 = vcvt.s32.f32 %v898_v62  ;;  %v899_v7 = vcvt.s32.f32 %v897_v5 }
 0xa7c   : > { %v891_v0 = vpop.xlane.xlu1 %890  ;;  %901 = vmin.xlane.f32.xlu1 %v900_v63 }
 0xa7d   : > { %vm893_vm11 = vcmp.le.f32.partialorder %v885_v56, %v891_v0 }
 0xa7e   : > { %v895_v1 = vsel %vm893_vm11, %v1504_v23, 16 }
 0xa7f   : > { %v911_v2 = vsel %vm377_vm3, %v895_v1, 2147483647 }
 0xa80   : > { %v913_v3 = vshra.s32 %v911_v2, 16  ;;  %v912_v9 = vand.u32 65535, %v911_v2 }
 0xa82   : > { %v915_v4 = vcvt.s32.f32 %v913_v3  ;;  %v914_v11 = vcvt.s32.f32 %v912_v9 }
 0xa84   : > { %916 = vmin.xlane.f32.xlu0 %v915_v4 }
 0xaef   : > { %v902_v6 = vpop.xlane.xlu1 %901 }
 0xaf0   : > { %vm903_vm12 = vcmp.eq.f32.partialorder %v900_v63, %v902_v6  ;;  %v908_v13 = vcvt.f32.s32 %v902_v6  ;;  %v713_v63 = vsub.f32 %v710_v61, %v292_v50 }
 0xaf1   : > { %v904_v8 = vsel %vm903_vm12, %v899_v7, inf }
 0xaf2   : > { %905 = vmin.xlane.f32.xlu0 %v904_v8  ;;  %v909_v15 = vshll.u32 %v908_v13, 16  ;;  %1231 = vst.msk [vmem:[%s1639_s29 + $0x18] sm:$0xf] %vm465_vm5, %v713_v63 }
 0xaf7   : > { %v917_v10 = vpop.xlane.xlu0 %916 }
 0xaf8   : > { %vm918_vm13 = vcmp.eq.f32.partialorder %v915_v4, %v917_v10  ;;  %v923_v18 = vcvt.f32.s32 %v917_v10 }
 0xaf9   : > { %v919_v12 = vsel %vm918_vm13, %v914_v11, inf }
 0xafa   : > { %920 = vmin.xlane.f32.xlu2 %v919_v12  ;;  %v924_v21 = vshll.u32 %v923_v18, 16 }
 0xb65   : > { %v906_v14 = vpop.xlane.xlu0 %905 }
 0xb66   : > { %v907_v16 = vcvt.f32.s32 %v906_v14 }
 0xb68   : > { %v910_v17 = vadd.s32 %v909_v15, %v907_v16 }
 0xb6a   : > { %vm926_vm14 = vcmp.eq.s32.totalorder %v1504_v23, %v910_v17 }
 0xb6b   : > { %v928_v19 = vsel %vm926_vm14, inf, %v884_v52  ;;  %v1247_v29 = vsel %vm926_vm14, 1.0, %v1405_v54  ;;  %v544_v52 = vpop.f32.mrf.mxu2 }
 0xb6c   : > { %930 = vst.msk [vmem:[#allocation2] sm:$0xff] %vm377_vm3, %v928_v19  ;;  %v547_v55 = vsub.f32 %v544_v52, %v292_v50 }
 0xb6d   : > { %v921_v20 = vpop.xlane.xlu2 %920  ;;  %1218 = vst.msk [vmem:[%s1639_s29 + $0xc] sm:$0xf] %vm465_vm5, %v544_v52 }
 0xb6e   : > { %v922_v22 = vcvt.f32.s32 %v921_v20  ;;  %1217 = vst.msk [vmem:[%s1639_s29 + $0x8] sm:$0xf] %vm465_vm5, %v547_v55 }
 0xb70   : > { %v925_v24 = vadd.s32 %v924_v21, %v922_v22 }
 0xb72   : > { %vm927_vm15 = vcmp.eq.s32.totalorder %v1504_v23, %v925_v24 }
 0xb73   : > { %v929_v25 = vsel %vm927_vm15, inf, %v885_v56  ;;  %v1248_v26 = vsel %vm927_vm15, 1.0, %v1405_v54  ;;  %v967_v27 = vld [vmem:[#allocation2] sm:$0xff]  ;;  %v627_v56 = vpop.f32.mrf.mxu3  ;;  %v793_v62 = vpop.f32.mrf.mxu2 }
 0xb74   : > { %931 = vst.msk [vmem:[#allocation2 + $0x8] sm:$0xff] %vm377_vm3, %v929_v25  ;;  %1249 = vmatpush.xpose.msk.msrb.mxu0 %vm377_vm3, %v1248_v26  ;;  %v969_v28 = vsel %vm377_vm3, %v967_v27, inf  ;;  %v630_v58 = vsub.f32 %v627_v56, %v292_v50  ;;  %v796_v0 = vsub.f32 %v793_v62, %v292_v50 }
 0xb75   : > { %970 = vmin.xlane.f32.xlu2 %v969_v28  ;;  %1225 = vst.msk [vmem:[%s1639_s29 + $0x14] sm:$0xf] %vm465_vm5, %v627_v56 }
 0xb76   : > { %1224 = vst.msk [vmem:[%s1639_s29 + $0x10] sm:$0xf] %vm465_vm5, %v630_v58 }
 0xb77   : > { %1239 = vst.msk [vmem:[%s1639_s29 + $0x24] sm:$0xf] %vm465_vm5, %v793_v62 }
 0xb78   : > { %1250 = vmatpush.xpose.msk.msrb.mxu0 %vm377_vm3, %v1247_v29  ;;  %1238 = vst.msk [vmem:[%s1639_s29 + $0x20] sm:$0xf] %vm465_vm5, %v796_v0 }
 0xb7b   : > { %v968_v30 = vld [vmem:[#allocation2 + $0x8] sm:$0xff]  ;;  %1251 = vmatmul.msk.f32.vlgmr.msrb.gmra.mxu0 %vm377_vm3, %v1526_v59  ;;  %v876_v1 = vpop.f32.mrf.mxu3 }
 0xb7c   : > { %v972_v31 = vsel %vm377_vm3, %v968_v30, inf  ;;  %v879_v2 = vsub.f32 %v876_v1, %v292_v50  ;;  %1246 = vst.msk [vmem:[%s1639_s29 + $0x2c] sm:$0xf] %vm465_vm5, %v876_v1 }
 0xb7d   : > { %973 = vmin.xlane.f32.xlu1 %v972_v31 }
 0xb7e   : > { %1245 = vst.msk [vmem:[%s1639_s29 + $0x28] sm:$0xf] %vm465_vm5, %v879_v2 }
 0xbe8   : > { %v971_v32 = vpop.xlane.xlu2 %970 }
 0xbe9   : > { %vm975_vm0 = vcmp.le.f32.partialorder %v967_v27, %v971_v32 }
 0xbea   : > { %v977_v33 = vsel %vm975_vm0, %v1504_v23, 16 }
 0xbeb   : > { %v979_v34 = vsel %vm377_vm3, %v977_v33, 2147483647 }
 0xbec   : > { %v981_v35 = vshra.s32 %v979_v34, 16  ;;  %v980_v42 = vand.u32 65535, %v979_v34 }
 0xbee   : > { %v983_v36 = vcvt.s32.f32 %v981_v35  ;;  %v982_v44 = vcvt.s32.f32 %v980_v42 }
 0xbf0   : > { %v974_v37 = vpop.xlane.xlu1 %973  ;;  %984 = vmin.xlane.f32.xlu1 %v983_v36 }
 0xbf1   : > { %vm976_vm1 = vcmp.le.f32.partialorder %v968_v30, %v974_v37 }
 0xbf2   : > { %v978_v38 = vsel %vm976_vm1, %v1504_v23, 16 }
 0xbf3   : > { %v994_v39 = vsel %vm377_vm3, %v978_v38, 2147483647 }
 0xbf4   : > { %v996_v40 = vshra.s32 %v994_v39, 16  ;;  %v995_v46 = vand.u32 65535, %v994_v39 }
 0xbf6   : > { %v998_v41 = vcvt.s32.f32 %v996_v40  ;;  %v997_v48 = vcvt.s32.f32 %v995_v46 }
 0xbf8   : > { %999 = vmin.xlane.f32.xlu0 %v998_v41  ;;  %v959_v57 = vpop.f32.mrf.mxu0 }
 0xbf9   : > { %v962_v60 = vsub.f32 %v959_v57, %v292_v50  ;;  %1253 = vst.msk [vmem:[%s1639_s29 + $0x34] sm:$0xf] %vm465_vm5, %v959_v57 }
 0xbfb   : > { %1252 = vst.msk [vmem:[%s1639_s29 + $0x30] sm:$0xf] %vm465_vm5, %v962_v60 }
 0xc63   : > { %v985_v43 = vpop.xlane.xlu1 %984 }
 0xc64   : > { %vm986_vm2 = vcmp.eq.f32.partialorder %v983_v36, %v985_v43  ;;  %v991_v4 = vcvt.f32.s32 %v985_v43 }
 0xc65   : > { %v987_v45 = vsel %vm986_vm2, %v982_v44, inf }
 0xc66   : > { %988 = vmin.xlane.f32.xlu0 %v987_v45  ;;  %v992_v8 = vshll.u32 %v991_v4, 16 }
 0xc6b   : > { %v1000_v47 = vpop.xlane.xlu0 %999 }
 0xc6c   : > { %vm1001_vm4 = vcmp.eq.f32.partialorder %v998_v41, %v1000_v47  ;;  %v1006_v5 = vcvt.f32.s32 %v1000_v47 }
 0xc6d   : > { %v1002_v49 = vsel %vm1001_vm4, %v997_v48, inf }
 0xc6e   : > { %1003 = vmin.xlane.f32.xlu2 %v1002_v49  ;;  %v1007_v9 = vshll.u32 %v1006_v5, 16 }
 0xcd9   : > { %v989_v3 = vpop.xlane.xlu0 %988 }
 0xcda   : > { %v990_v6 = vcvt.f32.s32 %v989_v3 }
 0xcdc   : > { %v993_v11 = vadd.s32 %v992_v8, %v990_v6 }
 0xcde   : > { %vm1009_vm7 = vcmp.eq.s32.totalorder %v1504_v23, %v993_v11 }
 0xcdf   : > { %v1254_v14 = vsel %vm1009_vm7, 1.0, %v1405_v54 }
 0xce1   : > { %v1004_v7 = vpop.xlane.xlu2 %1003 }
 0xce2   : > { %v1005_v10 = vcvt.f32.s32 %v1004_v7 }
 0xce4   : > { %v1008_v12 = vadd.s32 %v1007_v9, %v1005_v10 }
 0xce6   : > { %vm1010_vm6 = vcmp.eq.s32.totalorder %v1504_v23, %v1008_v12 }
 0xce7   : > { %v1255_v13 = vsel %vm1010_vm6, 1.0, %v1405_v54 }
 0xce8   : > { %1256 = vmatpush.xpose.msk.msra.mxu1 %vm377_vm3, %v1255_v13 }
 0xcec   : > { %1257 = vmatpush.xpose.msk.msra.mxu1 %vm377_vm3, %v1254_v14 }
 0xcef   : > { %1258 = vmatmul.msk.f32.vlgmr.msra.gmra.mxu1 %vm377_vm3, %v1526_v59 }
 0xd6c   : > { %v1046_v15 = vpop.f32.mrf.mxu1 }
 0xd6d   : > { %v1049_v23 = vsub.f32 %v1046_v15, %v292_v50  ;;  %1260 = vst.msk [vmem:[%s1639_s29 + $0x3c] sm:$0xf] %vm465_vm5, %v1046_v15 }
 0xd6f   : > { %1259 = vst.msk [vmem:[%s1639_s29 + $0x38] sm:$0xf] %vm465_vm5, %v1049_v23 }
 0xd70   : > { %1352 = shalt.err (!%p1349_p5)
}
 0xd71   : > { %s1406_s14 = smov 64   ;;  %s1407_s26 = smov 4  }
 0xd72   : > { %1267 = dma.vmem_to_hbm [thread:$0]  (%p1473_p4), %s1072_s8, 1024, %s1074_s9, %s1055_s10, %s1406_s14, %s1406_s14, %s1407_s26  }
 0xd73 PF: > { %p1273_p6 = scmp.ge.s32.totalorder %s1403_s20, 2  ;;  %s1088_s29 = sand.u32 1, %s1383_s15  }
 0xd74   : > { %s1089_s30 = scalar_lea.sflag [#allocation4], %s1088_s29 }
 0xd75   : > { %p1270_p7 = pnand %p1273_p6, %p1480_p8 }
 0xd77   : > { %p1271_p9 = pneg %p1270_p7 }
 0xd79   : > { %1378 = dma.done.wait (%p1271_p9), %s1089_s30, 1024  }
 0xd7a   : > { %1380 = vsyncadd (%p1271_p9), %s1089_s30, 4294966272  ;;  %s17_s20 = sadd.s32 1, %s1403_s20   ;;  %s1727_s15 = smov %s1387_s16 }
 0xd7b   : > { %p14_p10 = scmp.ge.s32.totalorder %s17_s20, 4   ;;  %s1728_s16 = smov %s1391_s17 }
 0xd7c   : > { %s1729_s17 = smov %s1486_s28  ;;  %s1730_s18 = smov %s1399_s19 }
 0xd7d   : > { %s1731_s19 = smov %s1733_s23  ;;  %16 = sbr.rel (!%p14_p10) target bundleno = 4 (0x4), region = 103 }
 0xd82   :  { %1095 = vsyncpa [#allocation4], 1 }
 0xd83   :  { %1097 = vsyncpa [#allocation4 + $0x1], 1 }

</bundles_post_ra>
